<compile_context>
chip_gen: v7x
topology: tpu7x:2x2x1
jax: 0.10.0
libtpu: 0.0.40
codegen_flags: <defaults>
</compile_context>

<pallas_src>
import functools

import jax
import jax.numpy as jnp
from jax import lax
from jax.experimental import pallas as pl
from jax.experimental.pallas import tpu as pltpu


def _round_up(x, m):
    return -(-x // m) * m


# ----------------------------------------------------------------------------
# Kernel
# ----------------------------------------------------------------------------
def _kernel(x_ref, xh_ref, m_ref, mh_ref,
            pn_g_ref, pn_b_ref,
            glu_w_ref, glu_b_ref,
            cw_ref, conv_b_ref,
            cn_g_ref, cn_b_ref,
            out_w_ref, out_b_ref,
            o_ref,
            xraw_ref, mraw_ref, cpad_ref,
            *, block_s, H, K, cg, pad, eps, use_mxu, chunk):
    """One (batch, seq-tile) block: prenorm LN -> GLU -> mask -> grouped conv
    -> LN -> SiLU -> output projection -> residual."""

    x = x_ref[0]               # (block_s, H) f32, centre rows (also the residual)
    xh = xh_ref[0, 0]          # (2*pad, H)   halo rows (zero outside the sequence)
    mh = mh_ref[0, 0]          # (2*pad, 1)   halo mask (zero outside the sequence)

    # ---- assemble the zero-padded raw window (centre + halos) once ---------
    # Halo rows outside the sequence arrive as zeros; LN turns them into the
    # prenorm bias but the (also zero-padded) mask halo zeroes them again, so
    # the conv sees exact zero padding at sequence boundaries.
    xraw_ref[pl.ds(pad, block_s), :] = x
    xraw_ref[pl.ds(0, pad), :] = xh[:pad]
    xraw_ref[pl.ds(pad + block_s, pad), :] = xh[pad:]
    mraw_ref[pl.ds(pad, block_s), :] = m_ref[0]
    mraw_ref[pl.ds(0, pad), :] = mh[:pad]
    mraw_ref[pl.ds(pad + block_s, pad), :] = mh[pad:]

    # ---- single LN -> GLU -> mask pass over the padded window --------------
    xfull = xraw_ref[...]                                  # (P, H) f32
    mu = jnp.mean(xfull, axis=-1, keepdims=True)
    var = jnp.mean((xfull - mu) ** 2, axis=-1, keepdims=True)
    hn = (xfull - mu) * lax.rsqrt(var + eps) * pn_g_ref[...] + pn_b_ref[...]
    z = jnp.dot(hn.astype(jnp.bfloat16), glu_w_ref[...],
                preferred_element_type=jnp.float32) + glu_b_ref[...]
    glu = z[:, H:] * jax.nn.sigmoid(z[:, :H]) * mraw_ref[...]   # masked conv input
    cpad_ref[...] = glu.astype(cpad_ref.dtype)             # one full-width store

    # ---- shared tail: conv LayerNorm + SiLU + out-proj + residual ----------
    def tail(conv_rows, x_rows):
        mu2 = jnp.mean(conv_rows, axis=-1, keepdims=True)
        var2 = jnp.mean((conv_rows - mu2) ** 2, axis=-1, keepdims=True)
        y = (conv_rows - mu2) * lax.rsqrt(var2 + eps) * cn_g_ref[...] + cn_b_ref[...]
        y = y * jax.nn.sigmoid(y)                           # SiLU (f32, v5e-safe)
        y = jnp.dot(y.astype(jnp.bfloat16), out_w_ref[...],
                    preferred_element_type=jnp.float32) + out_b_ref[...]
        # TODO(synk): hidden dropout is identity (eval mode); training-mode
        # stochastic dropout is not implemented in-kernel.
        return x_rows + y

    if use_mxu:
        # ---- grouped conv = K bf16 MXU matmuls vs block-diagonal weights ----
        #   out[s, o] = sum_k cpad[s + k, :] @ Wd[k][:, o]
        acc = jnp.zeros((block_s, H), jnp.float32)
        for k in range(K):                                  # static unroll
            win = cpad_ref[pl.ds(k, block_s), :]            # (block_s, H) bf16
            acc = acc + jnp.dot(win, cw_ref[k],
                                preferred_element_type=jnp.float32)
        o_ref[0] = tail(acc + conv_b_ref[...], x)
    else:
        # ---- VPU tap path: d-major rolls (2*cg-1 total), row-chunked,
        #      register-resident accumulation, taps fully unrolled. ----------
        wt = cw_ref[...]                                    # (Tp, H) f32, loaded once
        tw = 2 * cg - 1
        n_chunks = block_s // chunk

        @pl.loop(0, n_chunks)
        def _(ci):
            c0 = pl.multiple_of(ci * chunk, chunk)
            win = cpad_ref[pl.ds(c0, chunk + 2 * pad), :]   # (chunk + 2*pad, H)
            acc = jnp.zeros((chunk, H), jnp.float32)
            for di in range(tw):                            # static unroll
                d = di - (cg - 1)                           # within-group offset
                rolled = win if d == 0 else pltpu.roll(win, shift=(-d) % H, axis=1)
                for k in range(K):                          # static unroll
                    w_row = wt[k * tw + di:k * tw + di + 1, :]     # (1, H)
                    acc = acc + rolled[k:k + chunk, :] * w_row
            conv_rows = acc + conv_b_ref[...]
            x_rows = x_ref[0, pl.ds(c0, chunk), :]
            o_ref[0, pl.ds(c0, chunk), :] = tail(conv_rows, x_rows)


# ----------------------------------------------------------------------------
# One-time parameter repack (call at load time, NOT per forward call)
# ----------------------------------------------------------------------------
def prepare_params(params, *, conv_group_size, conv_kernel_size, use_mxu_conv=None):
    H = int(params["pn_g"].shape[0])
    cg = conv_group_size
    K = conv_kernel_size
    if use_mxu_conv is None:
        use_mxu_conv = H <= 256        # dense block-diag weights stay tiny there

    w = params["conv_w"].astype(jnp.float32)               # torch layout (H, cg, K)
    row = lambda v: v.reshape(1, -1).astype(jnp.float32)
    out = {
        "use_mxu_conv": bool(use_mxu_conv),
        "pn_g": row(params["pn_g"]), "pn_b": row(params["pn_b"]),
        "glu_w": params["glu_w"].astype(jnp.bfloat16),      # bf16 MXU operand
        "glu_b": row(params["glu_b"]),
        "conv_b": row(params["conv_b"]),
        "cn_g": row(params["cn_g"]), "cn_b": row(params["cn_b"]),
        "out_w": params["out_w"].astype(jnp.bfloat16),      # bf16 MXU operand
        "out_b": row(params["out_b"]),
    }

    if use_mxu_conv:
        # Dense per-tap block-diagonal matrices Wd[k, i, o] = W[o, i - (o//cg)*cg, k]
        # (zero outside o's group).
        i_idx = jnp.arange(H)[:, None]
        o_idx = jnp.arange(H)[None, :]
        same_group = (i_idx // cg) == (o_idx // cg)
        c_local = jnp.clip(i_idx - (o_idx // cg) * cg, 0, cg - 1)
        o_b = jnp.broadcast_to(o_idx, (H, H))
        vals = w[o_b, c_local, :]                           # (H, H, K)
        vals = jnp.where(same_group[..., None], vals, 0.0)
        out["conv_w_dense"] = jnp.transpose(vals, (2, 0, 1)).astype(jnp.bfloat16)  # (K,H,H)
    else:
        # Diagonal taps  w_taps[k, di, o] = W[o, o%cg + d, k],  d = di - (cg-1),
        # zero where o%cg + d leaves the group (also kills roll wrap-around).
        o_local = jnp.arange(H) % cg
        d = jnp.arange(-(cg - 1), cg)
        i_local = o_local[None, :] + d[:, None]             # (2cg-1, H)
        valid = (i_local >= 0) & (i_local < cg)
        i_clip = jnp.clip(i_local, 0, cg - 1)
        w_kio = jnp.transpose(w, (2, 1, 0))                 # (K, cg, H)
        idx = jnp.broadcast_to(i_clip[None], (K, 2 * cg - 1, H))
        taps = jnp.take_along_axis(w_kio, idx, axis=1)      # (K, 2cg-1, H)
        taps = jnp.where(valid[None], taps, 0.0)
        T = K * (2 * cg - 1)
        Tp = _round_up(T, 8)                                # 8-row packed layout
        taps2 = jnp.pad(taps.reshape(T, H), ((0, Tp - T), (0, 0)))
        out["w_taps"] = taps2.astype(jnp.float32)           # (Tp, H)
    return out


# ----------------------------------------------------------------------------
# Tiling / VMEM policy
# ----------------------------------------------------------------------------
def _vmem_capacity_bytes():
    try:
        return int(pltpu.get_tpu_info().vmem_capacity_bytes)
    except Exception:
        return 64 * 2 ** 20            # conservative (v7x per-core VMEM)


def _estimate_vmem_bytes(block_s, H, pad, K, cg, use_mxu):
    P = block_s + 2 * pad
    f32, bf16 = 4, 2
    # double-buffered pipeline blocks: x + halo + mask + mask-halo, plus output
    blocks = 2 * f32 * (block_s * H + 2 * pad * H + block_s + 2 * pad)
    blocks += 2 * f32 * block_s * H
    # scratch: raw window + raw mask + conv input
    scratch = f32 * P * H + f32 * P + (bf16 if use_mxu else f32) * P * H
    # resident weights (single-buffered)
    weights = bf16 * (2 * H * H + H * H) + f32 * 10 * H
    weights += bf16 * K * H * H if use_mxu else f32 * _round_up(K * (2 * cg - 1), 8) * H
    # largest live intermediates (GLU z (P, 2H) f32 + conv accumulator)
    interm = f32 * P * 2 * H + f32 * block_s * H
    return blocks + scratch + weights + interm


def _pick_block_s(S, H, B, pad, K, cg, use_mxu, vmem_cap):
    budget = int(0.45 * vmem_cap)
    cands = sorted({c for c in (1024, 512, 256, 128, 64, 32, 16, 8)
                    if c <= S and S % c == 0} | {S}, reverse=True)
    cands = [c for c in cands if c % 8 == 0 or c == S]
    fitting = [c for c in cands
               if _estimate_vmem_bytes(c, H, pad, K, cg, use_mxu) <= budget]
    if not fitting:
        fitting = [cands[-1]]
    # keep >= ~8 grid steps per TensorCore (v7x has 2 TCs) when possible
    good = [c for c in fitting if B * (S // c) >= 16]
    return good[0] if good else fitting[0]


# ----------------------------------------------------------------------------
# Wrapper
# ----------------------------------------------------------------------------
def groupbert_convolution(input_tensor, attention_mask, prepared, *,
                          conv_group_size, conv_kernel_size,
                          eps=1e-12, block_s=None):
    """input_tensor: (B, S, H) f32.  attention_mask: (B, 1, 1, S) extended
    HF-style mask (0 valid / -10000 masked).  prepared: prepare_params()."""
    input_tensor = input_tensor.astype(jnp.float32)
    B, S, H = input_tensor.shape
    K = conv_kernel_size
    cg = conv_group_size
    pad = (K - 1) // 2
    assert K % 2 == 1 and K >= 3, "odd conv_kernel_size >= 3 required"
    assert H % cg == 0
    use_mxu = bool(prepared["use_mxu_conv"])

    vmem_cap = _vmem_capacity_bytes()
    if block_s is None:
        block_s = _pick_block_s(S, H, B, pad, K, cg, use_mxu, vmem_cap)
    assert S % block_s == 0 and (block_s % 8 == 0 or block_s == S)
    nS = S // block_s
    P = block_s + 2 * pad

    # register-resident accumulation chunk for the tap path (~16 vregs of acc)
    chunk = block_s
    if not use_mxu:
        desired = max(8, (16384 // max(H, 1)) // 8 * 8)
        chunk = min(block_s, desired)
        if block_s % 8 == 0:
            while block_s % chunk:
                chunk -= 8
            chunk = max(chunk, 8)
        else:
            chunk = block_s

    # ---- glue: sequence mask exactly as in the torch module ----------------
    # (assumes the HF additive mask uses exactly 0 / -10000, like the module)
    am = 1.0 - attention_mask.astype(jnp.float32) / -10000.0
    mask = jnp.transpose(am[:, 0, :], (0, 2, 1)).astype(jnp.float32)    # (B,S,1)

    # ---- glue: per-tile conv halos (zero outside the sequence) -------------
    xp = jnp.pad(input_tensor, ((0, 0), (pad, pad), (0, 0)))
    mp = jnp.pad(mask, ((0, 0), (pad, pad), (0, 0)))
    base = jnp.arange(nS) * block_s
    halo_idx = jnp.concatenate(
        [base[:, None] + jnp.arange(pad)[None, :],
         base[:, None] + block_s + pad + jnp.arange(pad)[None, :]],
        axis=1)                                                          # (nS, 2*pad)
    x_halo = xp[:, halo_idx]          # (B, nS, 2*pad, H)
    m_halo = mp[:, halo_idx]          # (B, nS, 2*pad, 1)

    conv_w_arr = prepared["conv_w_dense"] if use_mxu else prepared["w_taps"]
    cpad_dtype = jnp.bfloat16 if use_mxu else jnp.float32

    kernel = functools.partial(_kernel, block_s=block_s, H=H, K=K, cg=cg,
                               pad=pad, eps=eps, use_mxu=use_mxu, chunk=chunk)

    def const(shape):
        n = len(shape)
        return pl.BlockSpec(shape, lambda b, i, _n=n: (0,) * _n)

    est = _estimate_vmem_bytes(block_s, H, pad, K, cg, use_mxu)
    vmem_limit = int(min(0.8 * vmem_cap, max(32 * 2 ** 20, 2 * est)))

    conv_flops = 2 * K * H * H if use_mxu else 2 * K * (2 * cg - 1) * H
    weight_bytes = 2 * (2 * H * H + H * H) + \
        (2 * K * H * H if use_mxu else 4 * _round_up(K * (2 * cg - 1), 8) * H)
    cost = pl.CostEstimate(
        flops=int(B * S * (4 * H * H + conv_flops + 2 * H * H)),
        transcendentals=int(2 * B * S * H),
        bytes_accessed=int(8 * B * S * H + 4 * B * S
                           + 4 * B * nS * 2 * pad * (H + 1) + weight_bytes))

    out = pl.pallas_call(
        kernel,
        out_shape=jax.ShapeDtypeStruct((B, S, H), jnp.float32),
        grid_spec=pltpu.PrefetchScalarGridSpec(
            num_scalar_prefetch=0,
            grid=(B, nS),
            in_specs=[
                pl.BlockSpec((1, block_s, H), lambda b, i: (b, i, 0)),        # x
                pl.BlockSpec((1, 1, 2 * pad, H), lambda b, i: (b, i, 0, 0)),  # x halo
                pl.BlockSpec((1, block_s, 1), lambda b, i: (b, i, 0)),        # mask
                pl.BlockSpec((1, 1, 2 * pad, 1), lambda b, i: (b, i, 0, 0)),  # mask halo
                const((1, H)), const((1, H)),                                 # prenorm g, b
                const((H, 2 * H)), const((1, 2 * H)),                         # GLU W (bf16), b
                const(conv_w_arr.shape),                                      # conv weights
                const((1, H)),                                                # conv bias
                const((1, H)), const((1, H)),                                 # conv_norm g, b
                const((H, H)), const((1, H)),                                 # out proj W (bf16), b
            ],
            out_specs=pl.BlockSpec((1, block_s, H), lambda b, i: (b, i, 0)),
            scratch_shapes=[
                pltpu.VMEM((P, H), jnp.float32),     # raw padded window
                pltpu.VMEM((P, 1), jnp.float32),     # raw padded mask
                pltpu.VMEM((P, H), cpad_dtype),      # conv input (GLU output)
            ],
        ),
        compiler_params=pltpu.CompilerParams(
            dimension_semantics=("parallel", "parallel"),
            vmem_limit_bytes=vmem_limit),
        cost_estimate=cost,
    )(
        input_tensor, x_halo, mask, m_halo,
        prepared["pn_g"], prepared["pn_b"],
        prepared["glu_w"], prepared["glu_b"],
        conv_w_arr, prepared["conv_b"],
        prepared["cn_g"], prepared["cn_b"],
        prepared["out_w"], prepared["out_b"],
    )
    return out


# ----------------------------------------------------------------------------
# Pure-JAX reference mirroring the PyTorch forward (eval mode)
# ----------------------------------------------------------------------------
def _reference(input_tensor, attention_mask, params, *,
               conv_group_size, conv_kernel_size, eps=1e-12,
               matmul_dtype=jnp.float32, conv_dtype=jnp.float32):
    B, S, H = input_tensor.shape
    K = conv_kernel_size
    pad = (K - 1) // 2
    groups = H // conv_group_size

    def ln(x, g, b):
        mu = jnp.mean(x, axis=-1, keepdims=True)
        var = jnp.mean((x - mu) ** 2, axis=-1, keepdims=True)
        return (x - mu) * lax.rsqrt(var + eps) * g + b

    def mm(a, w):
        return jnp.dot(a.astype(matmul_dtype), w.astype(matmul_dtype),
                       preferred_element_type=jnp.float32)

    h = ln(input_tensor, params["pn_g"], params["pn_b"])
    z = mm(h, params["glu_w"]) + params["glu_b"]
    h = z[..., H:] * jax.nn.sigmoid(z[..., :H])

    am = 1.0 - attention_mask / -10000.0
    mask = jnp.transpose(am[:, 0, :], (0, 2, 1))          # (B, S, 1)
    conv_in = jnp.transpose(h * mask, (0, 2, 1))          # (B, H, S)

    conv_out = lax.conv_general_dilated(
        conv_in.astype(conv_dtype), params["conv_w"].astype(conv_dtype),
        window_strides=(1,), padding=[(pad, pad)], feature_group_count=groups,
        dimension_numbers=("NCH", "OIH", "NCH"),
        preferred_element_type=jnp.float32,
    ) + params["conv_b"][None, :, None]
    conv_out = jnp.transpose(conv_out, (0, 2, 1))         # (B, S, H)

    y = ln(conv_out, params["cn_g"], params["cn_b"])
    y = y * jax.nn.sigmoid(y)
    y = mm(y, params["out_w"]) + params["out_b"]
    return input_tensor + y


# ----------------------------------------------------------------------------
if __name__ == "__main__":
    B, S, H = 2, 16, 128
    conv_group_size = 8            # -> 16 groups, 8 channels per group
    conv_kernel_size = 7

    key = jax.random.PRNGKey(0)
    ks = jax.random.split(key, 11)

    params = {
        "pn_g": 1.0 + 0.1 * jax.random.normal(ks[0], (H,), jnp.float32),
        "pn_b": 0.1 * jax.random.normal(ks[1], (H,), jnp.float32),
        "glu_w": 0.05 * jax.random.normal(ks[2], (H, 2 * H), jnp.float32),
        "glu_b": 0.05 * jax.random.normal(ks[3], (2 * H,), jnp.float32),
        # PyTorch Conv1d weight layout: (out_ch, in_ch/groups, K)
        "conv_w": 0.1 * jax.random.normal(
            ks[4], (H, conv_group_size, conv_kernel_size), jnp.float32),
        "conv_b": 0.05 * jax.random.normal(ks[5], (H,), jnp.float32),
        "cn_g": 1.0 + 0.1 * jax.random.normal(ks[6], (H,), jnp.float32),
        "cn_b": 0.1 * jax.random.normal(ks[7], (H,), jnp.float32),
        "out_w": 0.05 * jax.random.normal(ks[8], (H, H), jnp.float32),
        "out_b": 0.05 * jax.random.normal(ks[9], (H,), jnp.float32),
    }
    input_tensor = jax.random.normal(ks[10], (B, S, H), jnp.float32)

    # Extended HuggingFace-style attention mask: (B, 1, 1, S) with 0 / -10000.
    lengths = jnp.array([S, S - 5])
    pos = jnp.arange(S)[None, :]
    attn01 = (pos < lengths[:, None]).astype(jnp.float32)
    attention_mask = ((1.0 - attn01) * -10000.0)[:, None, None, :]

    common = dict(conv_group_size=conv_group_size,
                  conv_kernel_size=conv_kernel_size)

    ref_f32 = _reference(input_tensor, attention_mask, params, **common,
                         matmul_dtype=jnp.float32, conv_dtype=jnp.float32)
    ref_bf16_mm = _reference(input_tensor, attention_mask, params, **common,
                             matmul_dtype=jnp.bfloat16, conv_dtype=jnp.float32)
    ref_bf16_all = _reference(input_tensor, attention_mask, params, **common,
                              matmul_dtype=jnp.bfloat16, conv_dtype=jnp.bfloat16)

    # ---- MXU block-diagonal conv path (default for H <= 256) ---------------
    prep_mxu = prepare_params(params, **common, use_mxu_conv=True)
    out_mxu = jax.block_until_ready(
        groupbert_convolution(input_tensor, attention_mask, prep_mxu, **common,
                              block_s=8))          # 2 seq tiles -> exercises halos
    out_mxu_auto = jax.block_until_ready(
        groupbert_convolution(input_tensor, attention_mask, prep_mxu, **common))

    # ---- VPU tap path (large-H fallback), forced here to exercise it -------
    prep_tap = prepare_params(params, **common, use_mxu_conv=False)
    out_tap = jax.block_until_ready(
        groupbert_convolution(input_tensor, attention_mask, prep_tap, **common,
                              block_s=8))

    assert out_mxu.shape == (B, S, H)
    e1 = float(jnp.max(jnp.abs(out_mxu - ref_bf16_all)))
    e2 = float(jnp.max(jnp.abs(out_mxu - ref_f32)))
    e3 = float(jnp.max(jnp.abs(out_mxu_auto - ref_bf16_all)))
    e4 = float(jnp.max(jnp.abs(out_tap - ref_bf16_mm)))
    e5 = float(jnp.max(jnp.abs(out_tap - ref_f32)))
    assert e1 < 2e-3, e1          # MXU path vs matching-precision reference
    assert e3 < 2e-3, e3
    assert e4 < 2e-3, e4          # tap path vs matching-precision reference
    assert e2 < 5e-2, e2          # loose sanity vs pure-f32 reference
    assert e5 < 5e-2, e5
    print("KERNEL_OK")
</pallas_src>

<mosaic_0001>
module attributes {stable_mosaic.version = 11 : i64} {
  func.func @_kernel(%arg0: i32, %arg1: i32, %arg2: memref<1x8x128xf32, #tpu.memory_space<vmem>>, %arg3: memref<1x1x6x128xf32, #tpu.memory_space<vmem>>, %arg4: memref<1x8x1xf32, #tpu.memory_space<vmem>>, %arg5: memref<1x1x6x1xf32, #tpu.memory_space<vmem>>, %arg6: memref<1x128xf32, #tpu.memory_space<vmem>>, %arg7: memref<1x128xf32, #tpu.memory_space<vmem>>, %arg8: memref<128x256xbf16, #tpu.memory_space<vmem>>, %arg9: memref<1x256xf32, #tpu.memory_space<vmem>>, %arg10: memref<7x128x128xbf16, #tpu.memory_space<vmem>>, %arg11: memref<1x128xf32, #tpu.memory_space<vmem>>, %arg12: memref<1x128xf32, #tpu.memory_space<vmem>>, %arg13: memref<1x128xf32, #tpu.memory_space<vmem>>, %arg14: memref<128x128xbf16, #tpu.memory_space<vmem>>, %arg15: memref<1x128xf32, #tpu.memory_space<vmem>>, %arg16: memref<1x8x128xf32, #tpu.memory_space<vmem>>, %arg17: memref<14x128xf32, #tpu.memory_space<vmem>>, %arg18: memref<14x1xf32, #tpu.memory_space<vmem>>, %arg19: memref<14x128xbf16, #tpu.memory_space<vmem>>) attributes {dimension_semantics = [#tpu.dimension_semantics<parallel>, #tpu.dimension_semantics<parallel>], iteration_bounds = array<i64: 2, 2>, scalar_prefetch = 0 : i64, scratch_operands = 3 : i64, tpu.core_type = #tpu.core_type<tc>, window_params = [{transform_indices = @transform_0, window_bounds = array<i64: 1, 8, 128>}, {transform_indices = @transform_1, window_bounds = array<i64: 1, 1, 6, 128>}, {transform_indices = @transform_2, window_bounds = array<i64: 1, 8, 1>}, {transform_indices = @transform_3, window_bounds = array<i64: 1, 1, 6, 1>}, {pipeline_mode = #tpu.pipeline_mode<synchronous>, transform_indices = @transform_4, window_bounds = array<i64: 1, 128>}, {pipeline_mode = #tpu.pipeline_mode<synchronous>, transform_indices = @transform_5, window_bounds = array<i64: 1, 128>}, {pipeline_mode = #tpu.pipeline_mode<synchronous>, transform_indices = @transform_6, window_bounds = array<i64: 128, 256>}, {pipeline_mode = #tpu.pipeline_mode<synchronous>, transform_indices = @transform_7, window_bounds = array<i64: 1, 256>}, {pipeline_mode = #tpu.pipeline_mode<synchronous>, transform_indices = @transform_8, window_bounds = array<i64: 7, 128, 128>}, {pipeline_mode = #tpu.pipeline_mode<synchronous>, transform_indices = @transform_9, window_bounds = array<i64: 1, 128>}, {pipeline_mode = #tpu.pipeline_mode<synchronous>, transform_indices = @transform_10, window_bounds = array<i64: 1, 128>}, {pipeline_mode = #tpu.pipeline_mode<synchronous>, transform_indices = @transform_11, window_bounds = array<i64: 1, 128>}, {pipeline_mode = #tpu.pipeline_mode<synchronous>, transform_indices = @transform_12, window_bounds = array<i64: 128, 128>}, {pipeline_mode = #tpu.pipeline_mode<synchronous>, transform_indices = @transform_13, window_bounds = array<i64: 1, 128>}, {transform_indices = @transform_14, window_bounds = array<i64: 1, 8, 128>}]} {
    %c0 = arith.constant 0 : index
    %c0_0 = arith.constant 0 : index
    %c0_1 = arith.constant 0 : index
    %0 = vector.load %arg2[%c0, %c0_0, %c0_1] : memref<1x8x128xf32, #tpu.memory_space<vmem>>, vector<1x8x128xf32>
    %1 = vector.shape_cast %0 : vector<1x8x128xf32> to vector<8x128xf32>
    %c0_2 = arith.constant 0 : index
    %c0_3 = arith.constant 0 : index
    %c0_4 = arith.constant 0 : index
    %c0_5 = arith.constant 0 : index
    %2 = vector.load %arg3[%c0_2, %c0_3, %c0_4, %c0_5] : memref<1x1x6x128xf32, #tpu.memory_space<vmem>>, vector<1x1x6x128xf32>
    %3 = vector.shape_cast %2 : vector<1x1x6x128xf32> to vector<6x128xf32>
    %c0_6 = arith.constant 0 : index
    %c0_7 = arith.constant 0 : index
    %c0_8 = arith.constant 0 : index
    %c0_9 = arith.constant 0 : index
    %4 = vector.load %arg5[%c0_6, %c0_7, %c0_8, %c0_9] : memref<1x1x6x1xf32, #tpu.memory_space<vmem>>, vector<1x1x6x1xf32>
    %5 = vector.shape_cast %4 : vector<1x1x6x1xf32> to vector<6x1xf32>
    %c3 = arith.constant 3 : index
    %c0_10 = arith.constant 0 : index
    %6 = vector.load %arg17[%c3, %c0_10] : memref<14x128xf32, #tpu.memory_space<vmem>>, vector<8x128xf32>
    tpu.vector_store %arg17[%c3, %c0_10], %1 {strides = array<i32>} : memref<14x128xf32, #tpu.memory_space<vmem>>, vector<8x128xf32>,
    %7 = vector.extract_strided_slice %3 {offsets = [0, 0], sizes = [3, 128], strides = [1, 1]} : vector<6x128xf32> to vector<3x128xf32>
    %c0_11 = arith.constant 0 : index
    %c0_12 = arith.constant 0 : index
    %8 = vector.load %arg17[%c0_11, %c0_12] : memref<14x128xf32, #tpu.memory_space<vmem>>, vector<3x128xf32>
    tpu.vector_store %arg17[%c0_11, %c0_12], %7 {strides = array<i32>} : memref<14x128xf32, #tpu.memory_space<vmem>>, vector<3x128xf32>,
    %9 = vector.extract_strided_slice %3 {offsets = [3, 0], sizes = [3, 128], strides = [1, 1]} : vector<6x128xf32> to vector<3x128xf32>
    %c11 = arith.constant 11 : index
    %c0_13 = arith.constant 0 : index
    %10 = vector.load %arg17[%c11, %c0_13] : memref<14x128xf32, #tpu.memory_space<vmem>>, vector<3x128xf32>
    tpu.vector_store %arg17[%c11, %c0_13], %9 {strides = array<i32>} : memref<14x128xf32, #tpu.memory_space<vmem>>, vector<3x128xf32>,
    %c0_14 = arith.constant 0 : index
    %c0_15 = arith.constant 0 : index
    %c0_16 = arith.constant 0 : index
    %11 = vector.load %arg4[%c0_14, %c0_15, %c0_16] : memref<1x8x1xf32, #tpu.memory_space<vmem>>, vector<1x8x1xf32>
    %12 = vector.shape_cast %11 : vector<1x8x1xf32> to vector<8x1xf32>
    %c3_17 = arith.constant 3 : index
    %c0_18 = arith.constant 0 : index
    %13 = vector.load %arg18[%c3_17, %c0_18] : memref<14x1xf32, #tpu.memory_space<vmem>>, vector<8x1xf32>
    tpu.vector_store %arg18[%c3_17, %c0_18], %12 {strides = array<i32>} : memref<14x1xf32, #tpu.memory_space<vmem>>, vector<8x1xf32>,
    %14 = vector.extract_strided_slice %5 {offsets = [0, 0], sizes = [3, 1], strides = [1, 1]} : vector<6x1xf32> to vector<3x1xf32>
    %c0_19 = arith.constant 0 : index
    %c0_20 = arith.constant 0 : index
    %15 = vector.load %arg18[%c0_19, %c0_20] : memref<14x1xf32, #tpu.memory_space<vmem>>, vector<3x1xf32>
    tpu.vector_store %arg18[%c0_19, %c0_20], %14 {strides = array<i32>} : memref<14x1xf32, #tpu.memory_space<vmem>>, vector<3x1xf32>,
    %16 = vector.extract_strided_slice %5 {offsets = [3, 0], sizes = [3, 1], strides = [1, 1]} : vector<6x1xf32> to vector<3x1xf32>
    %c11_21 = arith.constant 11 : index
    %c0_22 = arith.constant 0 : index
    %17 = vector.load %arg18[%c11_21, %c0_22] : memref<14x1xf32, #tpu.memory_space<vmem>>, vector<3x1xf32>
    tpu.vector_store %arg18[%c11_21, %c0_22], %16 {strides = array<i32>} : memref<14x1xf32, #tpu.memory_space<vmem>>, vector<3x1xf32>,
    %c0_23 = arith.constant 0 : index
    %c0_24 = arith.constant 0 : index
    %18 = vector.load %arg17[%c0_23, %c0_24] : memref<14x128xf32, #tpu.memory_space<vmem>>, vector<14x128xf32>
    %cst = arith.constant dense<0.000000e+00> : vector<14xf32>
    %19 = vector.multi_reduction <add>, %18, %cst [1] : vector<14x128xf32> to vector<14xf32>
    %20 = vector.shape_cast %19 : vector<14xf32> to vector<14x1xf32>
    %cst_25 = arith.constant 1.280000e+02 : f32
    %21 = vector.broadcast %cst_25 : f32 to vector<14x1xf32>
    %22 = arith.divf %20, %21 : vector<14x1xf32>
    %23 = vector.broadcast %22 : vector<14x1xf32> to vector<14x128xf32>
    %24 = arith.subf %18, %23 : vector<14x128xf32>
    %25 = arith.mulf %24, %24 : vector<14x128xf32>
    %cst_26 = arith.constant dense<0.000000e+00> : vector<14xf32>
    %26 = vector.multi_reduction <add>, %25, %cst_26 [1] : vector<14x128xf32> to vector<14xf32>
    %27 = vector.shape_cast %26 : vector<14xf32> to vector<14x1xf32>
    %cst_27 = arith.constant 1.280000e+02 : f32
    %28 = vector.broadcast %cst_27 : f32 to vector<14x1xf32>
    %29 = arith.divf %27, %28 : vector<14x1xf32>
    %30 = vector.broadcast %22 : vector<14x1xf32> to vector<14x128xf32>
    %31 = arith.subf %18, %30 : vector<14x128xf32>
    %cst_28 = arith.constant 9.99999996E-13 : f32
    %32 = vector.broadcast %cst_28 : f32 to vector<14x1xf32>
    %33 = arith.addf %29, %32 : vector<14x1xf32>
    %34 = math.rsqrt %33 : vector<14x1xf32>
    %35 = vector.broadcast %34 : vector<14x1xf32> to vector<14x128xf32>
    %36 = arith.mulf %31, %35 : vector<14x128xf32>
    %c0_29 = arith.constant 0 : index
    %c0_30 = arith.constant 0 : index
    %37 = vector.load %arg6[%c0_29, %c0_30] : memref<1x128xf32, #tpu.memory_space<vmem>>, vector<1x128xf32>
    %38 = vector.broadcast %37 : vector<1x128xf32> to vector<14x128xf32>
    %39 = arith.mulf %36, %38 : vector<14x128xf32>
    %c0_31 = arith.constant 0 : index
    %c0_32 = arith.constant 0 : index
    %40 = vector.load %arg7[%c0_31, %c0_32] : memref<1x128xf32, #tpu.memory_space<vmem>>, vector<1x128xf32>
    %41 = vector.broadcast %40 : vector<1x128xf32> to vector<14x128xf32>
    %42 = arith.addf %39, %41 : vector<14x128xf32>
    %43 = arith.truncf %42 : vector<14x128xf32> to vector<14x128xbf16>
    %c0_33 = arith.constant 0 : index
    %c0_34 = arith.constant 0 : index
    %44 = vector.load %arg8[%c0_33, %c0_34] : memref<128x256xbf16, #tpu.memory_space<vmem>>, vector<128x256xbf16>
    %cst_35 = arith.constant dense<0.000000e+00> : vector<14x256xf32>
    %45 = tpu.matmul %43, %44, %cst_35 {dimension_numbers = #tpu.dot_dimension_numbers<[1], [0], [0], [1], [0, 0, 1, 1], [], []>} : vector<14x128xbf16>, vector<128x256xbf16>, vector<14x256xf32> -> vector<14x256xf32>
    %c0_36 = arith.constant 0 : index
    %c0_37 = arith.constant 0 : index
    %46 = vector.load %arg9[%c0_36, %c0_37] : memref<1x256xf32, #tpu.memory_space<vmem>>, vector<1x256xf32>
    %47 = vector.broadcast %46 : vector<1x256xf32> to vector<14x256xf32>
    %48 = arith.addf %45, %47 : vector<14x256xf32>
    %49 = vector.extract_strided_slice %48 {offsets = [0, 128], sizes = [14, 128], strides = [1, 1]} : vector<14x256xf32> to vector<14x128xf32>
    %50 = vector.extract_strided_slice %48 {offsets = [0, 0], sizes = [14, 128], strides = [1, 1]} : vector<14x256xf32> to vector<14x128xf32>
    %51 = arith.negf %50 : vector<14x128xf32>
    %52 = math.exp %51 : vector<14x128xf32>
    %cst_38 = arith.constant 1.000000e+00 : f32
    %53 = vector.broadcast %cst_38 : f32 to vector<14x128xf32>
    %54 = arith.addf %53, %52 : vector<14x128xf32>
    %55 = arith.divf %53, %54 : vector<14x128xf32>
    %56 = arith.mulf %49, %55 : vector<14x128xf32>
    %c0_39 = arith.constant 0 : index
    %c0_40 = arith.constant 0 : index
    %57 = vector.load %arg18[%c0_39, %c0_40] : memref<14x1xf32, #tpu.memory_space<vmem>>, vector<14x1xf32>
    %58 = vector.broadcast %57 : vector<14x1xf32> to vector<14x128xf32>
    %59 = arith.mulf %56, %58 : vector<14x128xf32>
    %60 = arith.truncf %59 : vector<14x128xf32> to vector<14x128xbf16>
    %c0_41 = arith.constant 0 : index
    %c0_42 = arith.constant 0 : index
    %61 = vector.load %arg19[%c0_41, %c0_42] : memref<14x128xbf16, #tpu.memory_space<vmem>>, vector<14x128xbf16>
    tpu.vector_store %arg19[%c0_41, %c0_42], %60 {strides = array<i32>} : memref<14x128xbf16, #tpu.memory_space<vmem>>, vector<14x128xbf16>,
    %cst_43 = arith.constant 0.000000e+00 : f32
    %62 = vector.broadcast %cst_43 : f32 to vector<8x128xf32>
    %c0_44 = arith.constant 0 : index
    %c0_45 = arith.constant 0 : index
    %63 = vector.load %arg19[%c0_44, %c0_45] : memref<14x128xbf16, #tpu.memory_space<vmem>>, vector<8x128xbf16>
    %c0_46 = arith.constant 0 : index
    %c0_47 = arith.constant 0 : index
    %c0_48 = arith.constant 0 : index
    %64 = vector.load %arg10[%c0_46, %c0_47, %c0_48] : memref<7x128x128xbf16, #tpu.memory_space<vmem>>, vector<1x128x128xbf16>
    %65 = vector.shape_cast %64 : vector<1x128x128xbf16> to vector<128x128xbf16>
    %cst_49 = arith.constant dense<0.000000e+00> : vector<8x128xf32>
    %66 = tpu.matmul %63, %65, %cst_49 {dimension_numbers = #tpu.dot_dimension_numbers<[1], [0], [0], [1], [0, 0, 1, 1], [], []>} : vector<8x128xbf16>, vector<128x128xbf16>, vector<8x128xf32> -> vector<8x128xf32>
    %67 = arith.addf %62, %66 : vector<8x128xf32>
    %c1 = arith.constant 1 : index
    %c0_50 = arith.constant 0 : index
    %68 = vector.load %arg19[%c1, %c0_50] : memref<14x128xbf16, #tpu.memory_space<vmem>>, vector<8x128xbf16>
    %c1_51 = arith.constant 1 : index
    %c0_52 = arith.constant 0 : index
    %c0_53 = arith.constant 0 : index
    %69 = vector.load %arg10[%c1_51, %c0_52, %c0_53] : memref<7x128x128xbf16, #tpu.memory_space<vmem>>, vector<1x128x128xbf16>
    %70 = vector.shape_cast %69 : vector<1x128x128xbf16> to vector<128x128xbf16>
    %cst_54 = arith.constant dense<0.000000e+00> : vector<8x128xf32>
    %71 = tpu.matmul %68, %70, %cst_54 {dimension_numbers = #tpu.dot_dimension_numbers<[1], [0], [0], [1], [0, 0, 1, 1], [], []>} : vector<8x128xbf16>, vector<128x128xbf16>, vector<8x128xf32> -> vector<8x128xf32>
    %72 = arith.addf %67, %71 : vector<8x128xf32>
    %c2 = arith.constant 2 : index
    %c0_55 = arith.constant 0 : index
    %73 = vector.load %arg19[%c2, %c0_55] : memref<14x128xbf16, #tpu.memory_space<vmem>>, vector<8x128xbf16>
    %c2_56 = arith.constant 2 : index
    %c0_57 = arith.constant 0 : index
    %c0_58 = arith.constant 0 : index
    %74 = vector.load %arg10[%c2_56, %c0_57, %c0_58] : memref<7x128x128xbf16, #tpu.memory_space<vmem>>, vector<1x128x128xbf16>
    %75 = vector.shape_cast %74 : vector<1x128x128xbf16> to vector<128x128xbf16>
    %cst_59 = arith.constant dense<0.000000e+00> : vector<8x128xf32>
    %76 = tpu.matmul %73, %75, %cst_59 {dimension_numbers = #tpu.dot_dimension_numbers<[1], [0], [0], [1], [0, 0, 1, 1], [], []>} : vector<8x128xbf16>, vector<128x128xbf16>, vector<8x128xf32> -> vector<8x128xf32>
    %77 = arith.addf %72, %76 : vector<8x128xf32>
    %c3_60 = arith.constant 3 : index
    %c0_61 = arith.constant 0 : index
    %78 = vector.load %arg19[%c3_60, %c0_61] : memref<14x128xbf16, #tpu.memory_space<vmem>>, vector<8x128xbf16>
    %c3_62 = arith.constant 3 : index
    %c0_63 = arith.constant 0 : index
    %c0_64 = arith.constant 0 : index
    %79 = vector.load %arg10[%c3_62, %c0_63, %c0_64] : memref<7x128x128xbf16, #tpu.memory_space<vmem>>, vector<1x128x128xbf16>
    %80 = vector.shape_cast %79 : vector<1x128x128xbf16> to vector<128x128xbf16>
    %cst_65 = arith.constant dense<0.000000e+00> : vector<8x128xf32>
    %81 = tpu.matmul %78, %80, %cst_65 {dimension_numbers = #tpu.dot_dimension_numbers<[1], [0], [0], [1], [0, 0, 1, 1], [], []>} : vector<8x128xbf16>, vector<128x128xbf16>, vector<8x128xf32> -> vector<8x128xf32>
    %82 = arith.addf %77, %81 : vector<8x128xf32>
    %c4 = arith.constant 4 : index
    %c0_66 = arith.constant 0 : index
    %83 = vector.load %arg19[%c4, %c0_66] : memref<14x128xbf16, #tpu.memory_space<vmem>>, vector<8x128xbf16>
    %c4_67 = arith.constant 4 : index
    %c0_68 = arith.constant 0 : index
    %c0_69 = arith.constant 0 : index
    %84 = vector.load %arg10[%c4_67, %c0_68, %c0_69] : memref<7x128x128xbf16, #tpu.memory_space<vmem>>, vector<1x128x128xbf16>
    %85 = vector.shape_cast %84 : vector<1x128x128xbf16> to vector<128x128xbf16>
    %cst_70 = arith.constant dense<0.000000e+00> : vector<8x128xf32>
    %86 = tpu.matmul %83, %85, %cst_70 {dimension_numbers = #tpu.dot_dimension_numbers<[1], [0], [0], [1], [0, 0, 1, 1], [], []>} : vector<8x128xbf16>, vector<128x128xbf16>, vector<8x128xf32> -> vector<8x128xf32>
    %87 = arith.addf %82, %86 : vector<8x128xf32>
    %c5 = arith.constant 5 : index
    %c0_71 = arith.constant 0 : index
    %88 = vector.load %arg19[%c5, %c0_71] : memref<14x128xbf16, #tpu.memory_space<vmem>>, vector<8x128xbf16>
    %c5_72 = arith.constant 5 : index
    %c0_73 = arith.constant 0 : index
    %c0_74 = arith.constant 0 : index
    %89 = vector.load %arg10[%c5_72, %c0_73, %c0_74] : memref<7x128x128xbf16, #tpu.memory_space<vmem>>, vector<1x128x128xbf16>
    %90 = vector.shape_cast %89 : vector<1x128x128xbf16> to vector<128x128xbf16>
    %cst_75 = arith.constant dense<0.000000e+00> : vector<8x128xf32>
    %91 = tpu.matmul %88, %90, %cst_75 {dimension_numbers = #tpu.dot_dimension_numbers<[1], [0], [0], [1], [0, 0, 1, 1], [], []>} : vector<8x128xbf16>, vector<128x128xbf16>, vector<8x128xf32> -> vector<8x128xf32>
    %92 = arith.addf %87, %91 : vector<8x128xf32>
    %c6 = arith.constant 6 : index
    %c0_76 = arith.constant 0 : index
    %93 = vector.load %arg19[%c6, %c0_76] : memref<14x128xbf16, #tpu.memory_space<vmem>>, vector<8x128xbf16>
    %c6_77 = arith.constant 6 : index
    %c0_78 = arith.constant 0 : index
    %c0_79 = arith.constant 0 : index
    %94 = vector.load %arg10[%c6_77, %c0_78, %c0_79] : memref<7x128x128xbf16, #tpu.memory_space<vmem>>, vector<1x128x128xbf16>
    %95 = vector.shape_cast %94 : vector<1x128x128xbf16> to vector<128x128xbf16>
    %cst_80 = arith.constant dense<0.000000e+00> : vector<8x128xf32>
    %96 = tpu.matmul %93, %95, %cst_80 {dimension_numbers = #tpu.dot_dimension_numbers<[1], [0], [0], [1], [0, 0, 1, 1], [], []>} : vector<8x128xbf16>, vector<128x128xbf16>, vector<8x128xf32> -> vector<8x128xf32>
    %97 = arith.addf %92, %96 : vector<8x128xf32>
    %c0_81 = arith.constant 0 : index
    %c0_82 = arith.constant 0 : index
    %98 = vector.load %arg11[%c0_81, %c0_82] : memref<1x128xf32, #tpu.memory_space<vmem>>, vector<1x128xf32>
    %99 = vector.broadcast %98 : vector<1x128xf32> to vector<8x128xf32>
    %100 = arith.addf %97, %99 : vector<8x128xf32>
    %cst_83 = arith.constant dense<0.000000e+00> : vector<8xf32>
    %101 = vector.multi_reduction <add>, %100, %cst_83 [1] : vector<8x128xf32> to vector<8xf32>
    %102 = vector.shape_cast %101 : vector<8xf32> to vector<8x1xf32>
    %cst_84 = arith.constant 1.280000e+02 : f32
    %103 = vector.broadcast %cst_84 : f32 to vector<8x1xf32>
    %104 = arith.divf %102, %103 : vector<8x1xf32>
    %105 = vector.broadcast %104 : vector<8x1xf32> to vector<8x128xf32>
    %106 = arith.subf %100, %105 : vector<8x128xf32>
    %107 = arith.mulf %106, %106 : vector<8x128xf32>
    %cst_85 = arith.constant dense<0.000000e+00> : vector<8xf32>
    %108 = vector.multi_reduction <add>, %107, %cst_85 [1] : vector<8x128xf32> to vector<8xf32>
    %109 = vector.shape_cast %108 : vector<8xf32> to vector<8x1xf32>
    %cst_86 = arith.constant 1.280000e+02 : f32
    %110 = vector.broadcast %cst_86 : f32 to vector<8x1xf32>
    %111 = arith.divf %109, %110 : vector<8x1xf32>
    %112 = vector.broadcast %104 : vector<8x1xf32> to vector<8x128xf32>
    %113 = arith.subf %100, %112 : vector<8x128xf32>
    %cst_87 = arith.constant 9.99999996E-13 : f32
    %114 = vector.broadcast %cst_87 : f32 to vector<8x1xf32>
    %115 = arith.addf %111, %114 : vector<8x1xf32>
    %116 = math.rsqrt %115 : vector<8x1xf32>
    %117 = vector.broadcast %116 : vector<8x1xf32> to vector<8x128xf32>
    %118 = arith.mulf %113, %117 : vector<8x128xf32>
    %c0_88 = arith.constant 0 : index
    %c0_89 = arith.constant 0 : index
    %119 = vector.load %arg12[%c0_88, %c0_89] : memref<1x128xf32, #tpu.memory_space<vmem>>, vector<1x128xf32>
    %120 = vector.broadcast %119 : vector<1x128xf32> to vector<8x128xf32>
    %121 = arith.mulf %118, %120 : vector<8x128xf32>
    %c0_90 = arith.constant 0 : index
    %c0_91 = arith.constant 0 : index
    %122 = vector.load %arg13[%c0_90, %c0_91] : memref<1x128xf32, #tpu.memory_space<vmem>>, vector<1x128xf32>
    %123 = vector.broadcast %122 : vector<1x128xf32> to vector<8x128xf32>
    %124 = arith.addf %121, %123 : vector<8x128xf32>
    %125 = arith.negf %124 : vector<8x128xf32>
    %126 = math.exp %125 : vector<8x128xf32>
    %cst_92 = arith.constant 1.000000e+00 : f32
    %127 = vector.broadcast %cst_92 : f32 to vector<8x128xf32>
    %128 = arith.addf %127, %126 : vector<8x128xf32>
    %129 = arith.divf %127, %128 : vector<8x128xf32>
    %130 = arith.mulf %124, %129 : vector<8x128xf32>
    %131 = arith.truncf %130 : vector<8x128xf32> to vector<8x128xbf16>
    %c0_93 = arith.constant 0 : index
    %c0_94 = arith.constant 0 : index
    %132 = vector.load %arg14[%c0_93, %c0_94] : memref<128x128xbf16, #tpu.memory_space<vmem>>, vector<128x128xbf16>
    %cst_95 = arith.constant dense<0.000000e+00> : vector<8x128xf32>
    %133 = tpu.matmul %131, %132, %cst_95 {dimension_numbers = #tpu.dot_dimension_numbers<[1], [0], [0], [1], [0, 0, 1, 1], [], []>} : vector<8x128xbf16>, vector<128x128xbf16>, vector<8x128xf32> -> vector<8x128xf32>
    %c0_96 = arith.constant 0 : index
    %c0_97 = arith.constant 0 : index
    %134 = vector.load %arg15[%c0_96, %c0_97] : memref<1x128xf32, #tpu.memory_space<vmem>>, vector<1x128xf32>
    %135 = vector.broadcast %134 : vector<1x128xf32> to vector<8x128xf32>
    %136 = arith.addf %133, %135 : vector<8x128xf32>
    %137 = arith.addf %1, %136 : vector<8x128xf32>
    %c0_98 = arith.constant 0 : index
    %c0_99 = arith.constant 0 : index
    %c0_100 = arith.constant 0 : index
    %138 = vector.load %arg16[%c0_98, %c0_99, %c0_100] : memref<1x8x128xf32, #tpu.memory_space<vmem>>, vector<1x8x128xf32>
    %139 = vector.shape_cast %138 : vector<1x8x128xf32> to vector<8x128xf32>
    %140 = vector.shape_cast %137 : vector<8x128xf32> to vector<1x8x128xf32>
    tpu.vector_store %arg16[%c0_98, %c0_99, %c0_100], %140 {strides = array<i32>} : memref<1x8x128xf32, #tpu.memory_space<vmem>>, vector<1x8x128xf32>,
    return
  }
  func.func @transform_0(%arg0: i32, %arg1: i32) -> (i32, i32, i32) {
    %c0_i32 = arith.constant 0 : i32
    %c0_i32_0 = arith.constant 0 : i32
    return %arg0, %arg1, %c0_i32 : i32, i32, i32
  }
  func.func @transform_1(%arg0: i32, %arg1: i32) -> (i32, i32, i32, i32) {
    %c0_i32 = arith.constant 0 : i32
    %c0_i32_0 = arith.constant 0 : i32
    %c0_i32_1 = arith.constant 0 : i32
    return %arg0, %arg1, %c0_i32, %c0_i32_0 : i32, i32, i32, i32
  }
  func.func @transform_2(%arg0: i32, %arg1: i32) -> (i32, i32, i32) {
    %c0_i32 = arith.constant 0 : i32
    %c0_i32_0 = arith.constant 0 : i32
    return %arg0, %arg1, %c0_i32 : i32, i32, i32
  }
  func.func @transform_3(%arg0: i32, %arg1: i32) -> (i32, i32, i32, i32) {
    %c0_i32 = arith.constant 0 : i32
    %c0_i32_0 = arith.constant 0 : i32
    %c0_i32_1 = arith.constant 0 : i32
    return %arg0, %arg1, %c0_i32, %c0_i32_0 : i32, i32, i32, i32
  }
  func.func @transform_4(%arg0: i32, %arg1: i32) -> (i32, i32) {
    %c0_i32 = arith.constant 0 : i32
    %c0_i32_0 = arith.constant 0 : i32
    %c0_i32_1 = arith.constant 0 : i32
    return %c0_i32, %c0_i32_0 : i32, i32
  }
  func.func @transform_5(%arg0: i32, %arg1: i32) -> (i32, i32) {
    %c0_i32 = arith.constant 0 : i32
    %c0_i32_0 = arith.constant 0 : i32
    %c0_i32_1 = arith.constant 0 : i32
    return %c0_i32, %c0_i32_0 : i32, i32
  }
  func.func @transform_6(%arg0: i32, %arg1: i32) -> (i32, i32) {
    %c0_i32 = arith.constant 0 : i32
    %c0_i32_0 = arith.constant 0 : i32
    %c0_i32_1 = arith.constant 0 : i32
    return %c0_i32, %c0_i32_0 : i32, i32
  }
  func.func @transform_7(%arg0: i32, %arg1: i32) -> (i32, i32) {
    %c0_i32 = arith.constant 0 : i32
    %c0_i32_0 = arith.constant 0 : i32
    %c0_i32_1 = arith.constant 0 : i32
    return %c0_i32, %c0_i32_0 : i32, i32
  }
  func.func @transform_8(%arg0: i32, %arg1: i32) -> (i32, i32, i32) {
    %c0_i32 = arith.constant 0 : i32
    %c0_i32_0 = arith.constant 0 : i32
    %c0_i32_1 = arith.constant 0 : i32
    %c0_i32_2 = arith.constant 0 : i32
    return %c0_i32, %c0_i32_0, %c0_i32_1 : i32, i32, i32
  }
  func.func @transform_9(%arg0: i32, %arg1: i32) -> (i32, i32) {
    %c0_i32 = arith.constant 0 : i32
    %c0_i32_0 = arith.constant 0 : i32
    %c0_i32_1 = arith.constant 0 : i32
    return %c0_i32, %c0_i32_0 : i32, i32
  }
  func.func @transform_10(%arg0: i32, %arg1: i32) -> (i32, i32) {
    %c0_i32 = arith.constant 0 : i32
    %c0_i32_0 = arith.constant 0 : i32
    %c0_i32_1 = arith.constant 0 : i32
    return %c0_i32, %c0_i32_0 : i32, i32
  }
  func.func @transform_11(%arg0: i32, %arg1: i32) -> (i32, i32) {
    %c0_i32 = arith.constant 0 : i32
    %c0_i32_0 = arith.constant 0 : i32
    %c0_i32_1 = arith.constant 0 : i32
    return %c0_i32, %c0_i32_0 : i32, i32
  }
  func.func @transform_12(%arg0: i32, %arg1: i32) -> (i32, i32) {
    %c0_i32 = arith.constant 0 : i32
    %c0_i32_0 = arith.constant 0 : i32
    %c0_i32_1 = arith.constant 0 : i32
    return %c0_i32, %c0_i32_0 : i32, i32
  }
  func.func @transform_13(%arg0: i32, %arg1: i32) -> (i32, i32) {
    %c0_i32 = arith.constant 0 : i32
    %c0_i32_0 = arith.constant 0 : i32
    %c0_i32_1 = arith.constant 0 : i32
    return %c0_i32, %c0_i32_0 : i32, i32
  }
  func.func @transform_14(%arg0: i32, %arg1: i32) -> (i32, i32, i32) {
    %c0_i32 = arith.constant 0 : i32
    %c0_i32_0 = arith.constant 0 : i32
    return %arg0, %arg1, %c0_i32 : i32, i32, i32
  }
}

</mosaic_0001>

<bundles_post_ra>
// kernel: tpu_custom_call.1
= control target key start
LH: loop header
LB: loop body
LE: loop exit
PB: predicated region body
PF: predicated region fallthrough
CT: control target
= control target key end

     0   :  { %s3309_s0 = inlined_call_operand.hbm [shape: f32[2,16,128], index: 0, kind: input, shape index: {}]   ;;  %s3310_s1 = inlined_call_operand.vmem [shape: f32[2,2,6,128], index: 1, kind: input, shape index: {}]   ;;  %s3311_s2 = inlined_call_operand.vmem [shape: f32[2,16,1], index: 2, kind: input, shape index: {}]   ;;  %s3312_s3 = inlined_call_operand.vmem [shape: f32[2,2,6,1], index: 3, kind: input, shape index: {}]   ;;  %s3313_s4 = inlined_call_operand.vmem [shape: f32[1,128], index: 4, kind: input, shape index: {}]   ;;  %s3314_s5 = inlined_call_operand.vmem [shape: f32[1,128], index: 5, kind: input, shape index: {}]   ;;  %s3315_s6 = inlined_call_operand.vmem [shape: bf16[128,256], index: 6, kind: input, shape index: {}]   ;;  %s3316_s7 = inlined_call_operand.vmem [shape: f32[1,256], index: 7, kind: input, shape index: {}]   ;;  %s3317_s8 = inlined_call_operand.hbm [shape: bf16[7,128,128], index: 8, kind: input, shape index: {}]   ;;  %s3318_s9 = inlined_call_operand.vmem [shape: f32[1,128], index: 9, kind: input, shape index: {}]   ;;  %s3319_s10 = inlined_call_operand.vmem [shape: f32[1,128], index: 10, kind: input, shape index: {}]   ;;  %s3320_s11 = inlined_call_operand.vmem [shape: f32[1,128], index: 11, kind: input, shape index: {}]   ;;  %s3321_s12 = inlined_call_operand.hbm [shape: bf16[128,128], index: 12, kind: input, shape index: {}]   ;;  %s3322_s13 = inlined_call_operand.vmem [shape: f32[1,128], index: 13, kind: input, shape index: {}]   ;;  %s3323_s14 = inlined_call_operand.hbm [shape: f32[2,16,128], index: 14, kind: output, shape index: {}]  }
   0x1   :  { %3335 = sst [smem:[#allocation19_spill]] %s3312_s3 }
   0x2   :  { %3336 = sst [smem:[#allocation20_spill]] %s3313_s4 }
   0x3   :  { %3337 = sst [smem:[#allocation21_spill]] %s3314_s5 }
   0x4   :  { %3338 = sst [smem:[#allocation22_spill]] %s3316_s7 }
   0x5   :  { %3339 = sst [smem:[#allocation23_spill]] %s3317_s8 }
   0x6   :  { %3340 = sst [smem:[#allocation24_spill]] %s3318_s9 }
   0x7   :  { %3341 = sst [smem:[#allocation25_spill]] %s3319_s10 }
   0x8   :  { %3342 = sst [smem:[#allocation26_spill]] %s3320_s11 }
   0x9   :  { %3343 = sst [smem:[#allocation27_spill]] %s3321_s12 }
   0xa   :  { %3344 = sst [smem:[#allocation28_spill]] %s3322_s13 }
   0xb   :  { %3345 = sst [smem:[#allocation29_spill]] %s3323_s14 }
   0xc   :  { %19 = vsyncpa [#allocation6], 0 }
   0xd   :  { %21 = vsyncpa [#allocation6 + $0x1], 0 }
   0xe   :  { %22 = vsyncpa [#allocation9], 0 }
   0xf   :  { %23 = vsyncpa [#allocation7], 0 }
  0x10   :  { %25 = vsyncpa [#allocation7 + $0x1], 0  ;;  %s2850_s29 = smov 0   ;;  %s2852_s30 = smov 0  }
  0x11   :  { %s2854_s15 = smov 0   ;;  %s2856_s16 = smov 0  }
  0x12   :  { %s2858_s17 = smov 0   ;;  %s2860_s18 = smov 0  }
  0x13   :  { %s2862_s19 = smov 0   ;;  %s2864_s20 = smov 0  }
  0x14 LB: > { %3346 = sst [smem:[#allocation15_spill]] %s2736_s29  ;;  %s3324_s21 = sadd.s32 4294967295, %s2764_s20   ;;  %s2764_s20 = sphi %s2864_s20, %s31_s20   ;;  %s2760_s19 = sphi %s2862_s19, %s3384_s19   ;;  %s2756_s18 = sphi %s2860_s18, %s3383_s18   ;;  %s2752_s17 = sphi %s2858_s17, %s3382_s17   ;;  %s2748_s16 = sphi %s2856_s16, %s3381_s16   ;;  %s2744_s15 = sphi %s2854_s15, %s3380_s15   ;;  %s2740_s30 = sphi %s2852_s30, %s3379_s30   ;;  %s2736_s29 = sphi %s2850_s29, %s3378_s29  }
  0x15   : > { %s2002_s22 = sadd.s32 4294967294, %s2764_s20   ;;  %p65_p0 = scmp.ne.s32.totalorder %s2740_s30, %s2736_s29 }
  0x16   : > { %p2896_p1 = scmp.eq.s32.totalorder %s3324_s21, 0  ;;  %p391_p2 = scmp.eq.s32.totalorder %s2002_s22, 3 }
  0x17   : > { %p2003_p4 = scmp.ge.s32.totalorder %s2764_s20, 1  ;;  %p398_p6 = scmp.lt.s32.totalorder %s2764_s20, 5 }
  0x18   : > { %s3347_s23 = scalar_select %p2896_p1, 1, 0 }
  0x19   : > { %p2902_p3 = por %p2896_p1, %p65_p0  ;;  %p2907_p5 = por %p391_p2, %p65_p0 }
  0x1a   : > { %p2912_p7 = pnand %p2003_p4, %p398_p6  ;;  %s2766_s27 = smov [#allocation8]  }
  0x1b   : > { %s3348_s24 = scalar_select %p2902_p3, 1, 0 }
  0x1c   : > { %s3349_s25 = scalar_select %p2907_p5, 1, 0 }
  0x1d   : > { %s3351_s26 = scalar_select %p2912_p7, 1, 0 }
  0x1e   : > { %3350 = sst [smem:[#allocation16_spill]] %s3349_s25  ;;  %s422_s28 = sshll.u32 %s2766_s27, 4  ;;  %s423_s28 = int_to_ptr.vmem [resolvable:$true] %s422_s28 }
  0x1f   : > { %p2369_p8 = pneg %p2912_p7  ;;  %s2767_s21 = smov [#allocation10]  }
  0x20   : > { %s444_s25 = sshll.u32 %s2767_s21, 4  ;;  %s3353_s8 = sld [smem:[#allocation23_spill]]  ;;  %s2924_s25 = int_to_ptr.vmem [resolvable:$true] %s444_s25 }
  0x21   : > { %p2920_p9 = pnand %p2369_p8, %p2896_p1 }
  0x23   : > { %p2578_p11 = pneg %p2920_p9 }
  0x26   : > { %s2576_s13 = scalar_lea.hbm %s3353_s8, 7168 }
  0x27   : > { %p2577_p10 = scmp.ne.s32.totalorder %s3353_s8, %s2576_s13  ;;  %p2583_p0 = scmp.lt.u32.totalorder %s2576_s13, %s3353_s8 }
  0x29   : > { %p2579_p12 = pnand %p2578_p11, %p2577_p10 }
  0x2b   : > { %p2580_p13 = pneg %p2579_p12 }
  0x2d   : > { %p2585_p2 = pnand %p2583_p0, %p2580_p13 }
  0x2f   : > { %2588 = shalt.err (!%p2585_p2)
}
  0x30   : > { %s2589_s21 = scalar_lea.vmem %s423_s28, 7168  ;;  %p2597_p5 = scmp.lt.s32.totalorder %s423_s28, %s423_s28 }
  0x31   : > { %p2590_p4 = scmp.ne.s32.totalorder %s423_s28, %s2589_s21  ;;  %p2598_p1 = scmp.lt.s32.totalorder %s2589_s21, %s2589_s21 }
  0x33   : > { %p2592_p6 = pnand %p2590_p4, %p2578_p11  ;;  %p2599_p3 = por %p2598_p1, %p2597_p5 }
  0x35   : > { %p2593_p8 = pneg %p2592_p6 }
  0x37   : > { %p2600_p7 = pnand %p2599_p3, %p2593_p8 }
  0x39   : > { %2603 = shalt.err (!%p2600_p7)
}
  0x3a   : > { %s2768_s11 = smov 64   ;;  %s2769_s14 = smov 4  }
  0x3b   : > { %2372 = dma.hbm_to_vmem [thread:$0]  (!%p2920_p9), %s3353_s8, 7168, %s423_s28, [#allocation9], %s2768_s11, %s2768_s11, %s2769_s14  }
  0x3c   : > { %s3354_s12 = sld [smem:[#allocation27_spill]] }
  0x42   : > { %s2604_s27 = scalar_lea.hbm %s3354_s12, 1024 }
  0x43   : > { %p2605_p10 = scmp.ne.s32.totalorder %s3354_s12, %s2604_s27  ;;  %p2611_p5 = scmp.lt.u32.totalorder %s2604_s27, %s3354_s12 }
  0x45   : > { %p2607_p1 = pnand %p2605_p10, %p2578_p11 }
  0x47   : > { %p2608_p3 = pneg %p2607_p1 }
  0x49   : > { %p2613_p7 = pnand %p2611_p5, %p2608_p3 }
  0x4b   : > { %2616 = shalt.err (!%p2613_p7)
}
  0x4c   : > { %s2617_s28 = scalar_lea.vmem %s2924_s25, 1024  ;;  %p2625_p2 = scmp.lt.s32.totalorder %s2924_s25, %s2924_s25 }
  0x4d   : > { %p2618_p12 = scmp.ne.s32.totalorder %s2924_s25, %s2617_s28  ;;  %p2626_p4 = scmp.lt.s32.totalorder %s2617_s28, %s2617_s28 }
  0x4f   : > { %p2620_p13 = pnand %p2618_p12, %p2578_p11  ;;  %p2627_p6 = por %p2626_p4, %p2625_p2 }
  0x51   : > { %p2621_p0 = pneg %p2620_p13 }
  0x53   : > { %p2628_p8 = pnand %p2627_p6, %p2621_p0 }
  0x55   : > { %2631 = shalt.err (!%p2628_p8)
}
  0x56   : > { %2375 = dma.hbm_to_vmem [thread:$0]  (!%p2920_p9), %s3354_s12, 1024, %s2924_s25, [#allocation9], %s2768_s11, %s2768_s11, %s2769_s14  }
  0x57   : > { %s3355_s7 = sadd.s32 4294967295, %s2764_s20   ;;  %s40_s9 = sadd.s32 1, %s2756_s18 }
  0x58   : > { %p385_p11 = scmp.eq.s32.totalorder %s3355_s7, 3  ;;  %p41_p10 = scmp.ge.s32.totalorder %s40_s9, 2 }
  0x59   : > { %s43_s22 = sadd.s32 1, %s2760_s19  ;;  %p59_p1 = scmp.ne.s32.totalorder %s2744_s15, %s2740_s30 }
  0x5a   : > { %p60_p3 = scmp.eq.s32.totalorder %s2764_s20, 0  ;;  %s3386_s9 = smov (%p41_p10, %s40_s9), 0 }
  0x5b   : > { %3356 = sst [smem:[#allocation17_spill]] %s3386_s9  ;;  %s3388_s22 = smov (!%p41_p10, %s43_s22), %s2760_s19 }
  0x5c   : > { %s48_s10 = ssub.s32 %s2756_s18, %s3386_s9  ;;  %s52_s13 = sadd.s32 1, %s2744_s15 }
  0x5d   : > { %p45_p5 = scmp.ge.s32.totalorder %s3388_s22, 2  ;;  %p2986_p9 = por %p385_p11, %p59_p1 }
  0x5e   : > { %p2990_p7 = por %p60_p3, %p59_p1  ;;  %s461_s14 = sand.u32 1, %s2744_s15  }
  0x5f   : > { %s3357_s25 = scalar_select %p2986_p9, 1, 0 }
  0x60   : > { %s3390_s22 = smov (%p45_p5, %s3388_s22), 0  ;;  %p2386_p12 = scmp.lt.s32.totalorder %s2764_s20, 4 }
  0x61   : > { %3358 = sst [smem:[#allocation18_spill]] %s3357_s25  ;;  %s2007_s29 = sshll.u32 %s461_s14, 3 }
  0x62   : > { %s47_s27 = ssub.s32 %s2760_s19, %s3390_s22  ;;  %s2008_s28 = sshll.u32 %s2760_s19, 1 }
  0x63   : > { %s49_s21 = sor.u32 %s48_s10, %s47_s27  ;;  %s470_s4 = sadd.s32 %s2756_s18, %s2008_s28 }
  0x64   : > { %p50_p13 = scmp.eq.s32.totalorder %s49_s21, 0  ;;  %s2009_s5 = sshll.u32 %s470_s4, 7 }
  0x65   : > { %s465_s7 = scalar_lea.vmem [#allocation5], %s2007_s29  ;;  %s3008_s3 = scalar_lea.hbm %s3309_s0, %s2009_s5 }
  0x66   : > { %s474_s8 = sshll.u32 %s465_s7, 4  ;;  %p3016_p0 = pnand %p2386_p12, %p2990_p7  ;;  %s3010_s8 = int_to_ptr.vmem [resolvable:$true] %s474_s8 }
  0x67   : > { %s3003_s12 = scalar_select %p50_p13, %s2744_s15, %s52_s13  }
  0x68   : > { %s462_s13 = scalar_lea.sflag [#allocation6], %s461_s14  ;;  %s2632_s29 = scalar_lea.hbm %s3008_s3, 128 }
  0x69   : > { %p2633_p2 = scmp.ne.s32.totalorder %s3008_s3, %s2632_s29  ;;  %p2634_p4 = pneg %p3016_p0 }
  0x6a   : > { %s2637_s11 = scalar_lea.hbm %s3309_s0, 512  ;;  %p2638_p11 = scmp.lt.u32.totalorder %s3008_s3, %s3309_s0 }
  0x6b   : > { %p2635_p6 = pnand %p2634_p4, %p2633_p2  ;;  %p2639_p10 = scmp.lt.u32.totalorder %s2637_s11, %s2632_s29 }
  0x6c   : > { %p2641_p3 = scmp.lt.u32.totalorder %s2632_s29, %s3008_s3 }
  0x6d   : > { %p2636_p8 = pneg %p2635_p6  ;;  %p2640_p1 = por %p2639_p10, %p2638_p11 }
  0x6f   : > { %p2642_p5 = por %p2641_p3, %p2640_p1 }
  0x71   : > { %p2643_p7 = pnand %p2642_p5, %p2636_p8 }
  0x73   : > { %2646 = shalt.err (!%p2643_p7)
}
  0x74   : > { %s2647_s14 = scalar_lea.vmem %s3010_s8, 128  ;;  %s2770_s28 = smov [#allocation5]  }
  0x75   : > { %p2648_p12 = scmp.ne.s32.totalorder %s3010_s8, %s2647_s14  ;;  %s2652_s4 = sshll.u32 %s2770_s28, 4  ;;  %s2653_s4 = int_to_ptr.vmem [resolvable:$false] %s2652_s4 }
  0x76   : > { %s2654_s5 = scalar_lea.vmem %s2653_s4, 256  ;;  %p2655_p6 = scmp.lt.s32.totalorder %s3010_s8, %s2653_s4 }
  0x77   : > { %p2650_p13 = pnand %p2648_p12, %p2634_p4  ;;  %p2656_p11 = scmp.lt.s32.totalorder %s2654_s5, %s2647_s14 }
  0x79   : > { %p2651_p2 = pneg %p2650_p13  ;;  %p2657_p10 = por %p2656_p11, %p2655_p6 }
  0x7b   : > { %p2658_p1 = pnand %p2657_p10, %p2651_p2 }
  0x7d   : > { %2661 = shalt.err (!%p2658_p1)
}
  0x7e   : > { %2379 = dma.hbm_to_vmem [thread:$0]  (!%p3016_p0), %s3008_s3, 128, %s3010_s8, %s462_s13  }
  0x7f   : > { %p3361_p8 = scmp.ne.s32.totalorder %s3351_s26, 0 }
  0x80   : > { %s3048_s7 = sand.u32 (!%p3361_p8), 1, %s2740_s30   ;;  %p3362_p4 = scmp.ne.s32.totalorder (!%p3361_p8), %s3348_s24, 0 }
  0x81   : > { %516 = sbr.rel (%p3361_p8) target bundleno = 1626 (0x65a), region = 76  ;;  %s2011_s29 = sshll.u32 (!%p3361_p8), %s3048_s7, 3 }
  0x82   : > { %s519_s9 = scalar_lea.sflag (!%p3361_p8), [#allocation6], %s3048_s7  ;;  %s522_s25 = scalar_lea.vmem (!%p3361_p8), [#allocation5], %s2011_s29 }
  0x88   : > { %2723 = dma.done.wait (%p3362_p4), %s519_s9, 128  }
  0x89   : > { %2725 = vsyncadd (%p3362_p4), %s519_s9, 4294967168  ;;  %p3363_p0 = scmp.ne.s32.totalorder %s3347_s23, 0 }
  0x8b   : > { %2727 = dma.done.wait (%p3363_p0), [#allocation9], 8192  }
  0x8c   : > { %2729 = vsyncadd (%p3363_p0), [#allocation9], 4294959104  ;;  %p599_p3 = scmp.lt.s32.totalorder %s2752_s17, 1  ;;  %p601_p5 = scmp.lt.s32.totalorder %s2748_s16, 1  ;;  %v624_v0 = vld [vmem:[%s522_s25] sm:$0xff]  ;;  %vm641_vm0 = vcmask 1045504  }
  0x8d   : > { %627 = vst [vmem:[#allocation2 + $0x3] sm:$0xff] %v624_v0  ;;  %v2463_v5 = vld [vmem:[%s3315_s6 + $0x4] ss:$8 sps:$4 sm:$0xff]   ;;  %v2465_v6 = vld [vmem:[%s3315_s6] ss:$8 sps:$4 sm:$0xff]   ;;  %v2771_v25 = vmov 0  }
  0x8e   : > { %s600_s3 = scalar_select %p599_p3, %s2752_s17, 1  ;;  %v2466_v7 = vld [vmem:[%s3315_s6 + $0x14] ss:$8 sps:$4 sm:$0xff]   ;;  %792 = vmatprep.subr.bf16.mxu0 %v2463_v5  ;;  %v2468_v17 = vld [vmem:[%s3315_s6 + $0x10] ss:$8 sps:$4 sm:$0xff]   ;;  %824 = vmatprep.mubr.bf16.mxu0 %v2771_v25  ;;  %vm631_vm1 = vcmask 7168   ;;  %v702_v5 = vlaneseq }
  0x8f   : > { %s602_s8 = scalar_select %p601_p5, %s2748_s16, 1  ;;  %793 = vmatpush1.bf16.msra.mxu0 %v2465_v6  ;;  %v2469_v18 = vld [vmem:[%s3315_s6 + $0x24] ss:$8 sps:$4 sm:$0xff]   ;;  %v2471_v19 = vld [vmem:[%s3315_s6 + $0x20] ss:$8 sps:$4 sm:$0xff]   ;;  %2461 = vset.pattern.permute.xlu0 %v2771_v25  ;;  %vm633_vm2 = vcmask 2048  }
  0x90   : > { %s2015_s26 = sshll.u32 %s600_s3, 1  ;;  %794 = vmatprep.subr.bf16.mxu0 %v2466_v7  ;;  %v2472_v20 = vld [vmem:[%s3315_s6 + $0x34] ss:$8 sps:$4 sm:$0xff]   ;;  %v2474_v21 = vld [vmem:[%s3315_s6 + $0x30] ss:$8 sps:$4 sm:$0xff]   ;;  %2462 = vset.pattern.permute.xlu1 %v2771_v25  ;;  %s3364_s25 = sld [smem:[#allocation19_spill]] }
  0x91   : > { %s604_s10 = sadd.s32 %s2015_s26, %s602_s8  ;;  %v2475_v22 = vld [vmem:[%s3315_s6 + $0x44] ss:$8 sps:$4 sm:$0xff]   ;;  %v2477_v23 = vld [vmem:[%s3315_s6 + $0x40] ss:$8 sps:$4 sm:$0xff]   ;;  %v2478_v24 = vld [vmem:[%s3315_s6 + $0x54] ss:$8 sps:$4 sm:$0xff]  }
  0x92   : > { %s3066_s13 = sshll.u32 %s604_s10, 3  ;;  %v2480_v26 = vld [vmem:[%s3315_s6 + $0x50] ss:$8 sps:$4 sm:$0xff]   ;;  %v2481_v27 = vld [vmem:[%s3315_s6 + $0x64] ss:$8 sps:$4 sm:$0xff]   ;;  %vm635_vm3 = vcmask 5123  }
  0x93   : > { %s606_s27 = scalar_lea.vmem %s3310_s1, %s3066_s13  ;;  %795 = vmatpush1.bf16.msra.mxu0 %v2468_v17  ;;  %v2483_v28 = vld [vmem:[%s3315_s6 + $0x60] ss:$8 sps:$4 sm:$0xff]   ;;  %v2484_v29 = vld [vmem:[%s3315_s6 + $0x74] ss:$8 sps:$4 sm:$0xff]   ;;  %v2486_v30 = vld [vmem:[%s3315_s6 + $0x70] ss:$8 sps:$4 sm:$0xff]   ;;  %s614_s4 = scalar_lea.vmem %s3311_s2, %s3066_s13 }
  0x94   : > { %v625_v1 = vld [vmem:[%s606_s27] sm:$0x3f]  ;;  %796 = vmatprep.subr.bf16.mxu0 %v2469_v18  ;;  %s3365_s26 = sld [smem:[#allocation20_spill]]  ;;  %s3366_s11 = sld [smem:[#allocation21_spill]]  ;;  %v2487_v52 = vld [vmem:[#allocation8] sm:$0xff]   ;;  %v2772_v53 = vmov 0.0  }
  0x95   : > { %629 = vst [vmem:[#allocation2 + $0x8] sm:$0x38] %v625_v1  ;;  %628 = vst [vmem:[#allocation2] sm:$0x7] %v625_v1  ;;  %v630_v32 = vld [vmem:[%s614_s4] sm:$0xff]  ;;  %2197 = vmatprep.subr.bf16.mxu1 %v2772_v53  ;;  %v2489_v55 = vld [vmem:[#allocation8 + $0x10] sm:$0xff]  }
  0x96   : > { %s622_s3 = scalar_lea.vmem %s3364_s25, %s3066_s13  ;;  %632 = vst.msk [vmem:[#allocation3 + $0x3] sm:$0xff] %vm631_vm1, %v630_v32  ;;  %v2488_v54 = vld [vmem:[#allocation8 + $0x8] sm:$0xff]   ;;  %v2490_v56 = vld [vmem:[#allocation8 + $0x40] sm:$0xff]   ;;  %v2491_v57 = vld [vmem:[#allocation8 + $0x18] sm:$0xff]   ;;  %vm2773_vm4 = vmmov 0   ;;  %v703_v6 = vshrl.u32 %v702_v5, 7 }
  0x97   : > { %797 = vmatpush1.bf16.msra.mxu0 %v2471_v19  ;;  %v626_v31 = vld [vmem:[%s622_s3] sm:$0x3f]  ;;  %2198 = vmatpush3.bf16.msra.mxu1 %v2490_v56  ;;  %v2493_v59 = vld [vmem:[#allocation8 + $0x20] sm:$0xff]   ;;  %v2494_v60 = vld [vmem:[#allocation8 + $0x50] sm:$0xff]   ;;  %s3367_s21 = sld [smem:[#allocation22_spill]]  ;;  %s3368_s4 = sld [smem:[#allocation24_spill]] }
  0x98   : > { %798 = vmatprep.subr.bf16.mxu0 %v2472_v20  ;;  %634 = vst.msk [vmem:[#allocation3] sm:$0x7] %vm633_vm2, %v626_v31  ;;  %v2492_v58 = vld [vmem:[#allocation8 + $0x48] sm:$0xff]   ;;  %2199 = vmatprep.subr.bf16.mxu1 %v2772_v53  ;;  %v2496_v62 = vld [vmem:[#allocation8 + $0x58] sm:$0xff]   ;;  %v2497_v63 = vld [vmem:[#allocation8 + $0x30] sm:$0xff]   ;;  %v704_v7 = vsub.s32 0, %v703_v6 }
  0x99   : > { %636 = vst.msk [vmem:[#allocation3 + $0x8] sm:$0x38] %vm635_vm3, %v626_v31  ;;  %v2495_v61 = vld [vmem:[#allocation8 + $0x28] sm:$0xff]   ;;  %v2498_v0 = vld [vmem:[#allocation8 + $0x60] sm:$0xff]   ;;  %v2499_v1 = vld [vmem:[#allocation8 + $0x38] sm:$0xff]   ;;  %2213 = vmatprep.mubr.msk.bf16.mxu1 %vm2773_vm4, %v2772_v53  ;;  %s3369_s25 = sld [smem:[#allocation25_spill]] }
  0x9a   : > { %v2021_v43 = vld [vmem:[%s3365_s26] ss:$0 sm:$0xff]  ;;  %v2515_v56 = vld [vmem:[#allocation8 + $0x98] sm:$0xff]   ;;  %s3370_s8 = sld [smem:[#allocation26_spill]]  ;;  %s2119_s26 = sshll.u32 %s2752_s17, 1 }
  0x9b   : > { %799 = vmatpush1.bf16.msra.mxu0 %v2474_v21  ;;  %v2022_v47 = vld [vmem:[%s3366_s11] ss:$0 sm:$0xff]  ;;  %2200 = vmatpush3.bf16.msra.mxu1 %v2492_v58  ;;  %v2523_v5 = vld [vmem:[#allocation8 + $0xb8] sm:$0xff]   ;;  %s1839_s10 = sadd.s32 %s2748_s16, %s2119_s26  ;;  %s3371_s27 = sld [smem:[#allocation28_spill]] }
  0x9c   : > { %v638_v2 = vld [vmem:[#allocation2 + $0x8] sm:$0x3f]  ;;  %v637_v4 = vld [vmem:[#allocation2] sm:$0xff]  ;;  %800 = vmatprep.subr.bf16.mxu0 %v2475_v22  ;;  %2201 = vmatprep.subr.bf16.mxu1 %v2772_v53  ;;  %v708_v22 = vsub.s32 1, %v703_v6  ;;  %s598_s14 = scalar_lea.vmem [#allocation11], %s2011_s29  ;;  %s3373_s5 = sld [smem:[#allocation29_spill]] }
  0x9d   : > { %v642_v3 = vsel %vm641_vm0, %v638_v2, 0.0  ;;  %s1843_s28 = sshll.u32 %s598_s14, 4  ;;  %s1828_s9 = scalar_lea.sflag [#allocation7], %s3048_s7  ;;  %s3257_s28 = int_to_ptr.vmem [resolvable:$true] %s1843_s28 }
  0x9e   : > { %643 = vadd.xlane.f32.xlu0 %v642_v3  ;;  %v2505_v3 = vld [vmem:[#allocation8 + $0x70] sm:$0xff]   ;;  %s2662_s29 = scalar_lea.vmem %s3257_s28, 128 }
  0x9f   : > { %801 = vmatpush1.bf16.msra.mxu0 %v2477_v23  ;;  %v849_v33 = vld [vmem:[#allocation3] sm:$0xff]  ;;  %2202 = vmatpush3.bf16.msra.mxu1 %v2494_v60  ;;  %v2517_v60 = vld [vmem:[#allocation8 + $0xa0] sm:$0xff]   ;;  %p2663_p7 = scmp.ne.s32.totalorder %s3257_s28, %s2662_s29 }
  0xa0   : > { %802 = vmatprep.subr.bf16.mxu0 %v2478_v24  ;;  %v850_v34 = vld [vmem:[#allocation3 + $0x8] sm:$0x3f]  ;;  %2203 = vmatprep.subr.bf16.mxu1 %v2772_v53 }
  0xa1   : > { %p2664_p12 = pnand %p2663_p7, %p2986_p9 }
  0xa2   : > { %639 = vadd.xlane.f32.xlu0 %v637_v4 }
  0xa3   : > { %803 = vmatpush1.bf16.msra.mxu0 %v2480_v26  ;;  %2204 = vmatpush3.bf16.msra.mxu1 %v2496_v62  ;;  %p2665_p13 = pneg %p2664_p12 }
  0xa4   : > { %804 = vmatprep.subr.bf16.mxu0 %v2481_v27  ;;  %2205 = vmatprep.subr.bf16.mxu1 %v2772_v53 }
  0xa7   : > { %805 = vmatpush1.bf16.msra.mxu0 %v2483_v28  ;;  %2206 = vmatpush3.bf16.msra.mxu1 %v2498_v0  ;;  %v2519_v0 = vld [vmem:[#allocation8 + $0xa8] sm:$0xff]  }
  0xa8   : > { %806 = vmatprep.subr.bf16.mxu0 %v2484_v29  ;;  %2207 = vmatprep.subr.bf16.mxu1 %v2772_v53 }
  0xab   : > { %807 = vmatpush1.bf16.msra.mxu0 %v2486_v30 }
  0xac   : > { %2217 = vmatprep.subr.bf16.mxu0 %v2772_v53 }
  0xb8   : > { %853 = vperm.xlu0 %2461, %v849_v33  }
 0x12b   : > { %v644_v8 = vpop.xlane.xlu0 %643 }
 0x12c   : > { %v647_v9 = vmul.f32 0.0078125, %v644_v8  ;;  %v700_v8 = vld [vmem:[%s3367_s21] sm:$0x3]  ;;  %s2120_s21 = sshll.u32 %s1839_s10, 7 }
 0x12d   : > { %v709_v23 = vrot.slane %v700_v8, %v708_v22  ;;  %v2533_v22 = vld [vmem:[#allocation8 + $0x120] sm:$0xff]   ;;  %s3255_s16 = scalar_lea.hbm %s3373_s5, %s2120_s21 }
 0x12e   : > { %v3082_v12 = vsub.f32 %v638_v2, %v647_v9  ;;  %v2500_v2 = vld [vmem:[#allocation8 + $0x68] sm:$0xff]   ;;  %v705_v9 = vrot.slane %v700_v8, %v704_v7  ;;  %v2524_v7 = vld [vmem:[#allocation8 + $0x150] sm:$0xff]   ;;  %v2525_v8 = vld [vmem:[#allocation8 + $0x100] sm:$0xff]  }
 0x12f   : > { %v640_v10 = vpop.xlane.xlu0 %639  ;;  %2208 = vmatpush3.bf16.msra.mxu1 %v2500_v2 }
 0x130   : > { %v646_v11 = vmul.f32 0.0078125, %v640_v10  ;;  %v651_v15 = vmul.f32 %v3082_v12, %v3082_v12  ;;  %2209 = vmatprep.subr.bf16.mxu1 %v2772_v53 }
 0x132   : > { %v648_v13 = vsub.f32 %v637_v4, %v646_v11  ;;  %v654_v16 = vsel %vm641_vm0, %v651_v15, 0.0  ;;  %v2507_v4 = vld [vmem:[#allocation8 + $0x78] sm:$0xff]  }
 0x133   : > { %2210 = vmatpush3.bf16.msra.mxu1 %v2505_v3  ;;  %v2521_v3 = vld [vmem:[#allocation8 + $0xb0] sm:$0xff]  }
 0x134   : > { %v650_v14 = vmul.f32 %v648_v13, %v648_v13  ;;  %2211 = vmatprep.subr.bf16.mxu1 %v2772_v53 }
 0x136   : > { %652 = vadd.xlane.f32.xlu1 %v650_v14 }
 0x137   : > { %2212 = vmatpush3.bf16.msra.mxu1 %v2507_v4  ;;  %v854_v26 = vpop.permute.xlu0 %853  ;;  %v2522_v4 = vld [vmem:[#allocation8 + $0x148] sm:$0xff]  }
 0x138   : > { %2237 = vmatprep.subr.bf16.mxu1 %v2772_v53 }
 0x13a   : > { %655 = vadd.xlane.f32.xlu1 %v654_v16 }
 0x14b   : > { %858 = vperm.xlu1 %2462, %v850_v34  }
 0x1c3   : > { %v653_v35 = vpop.xlane.xlu1 %652 }
 0x1c4   : > { %v657_v36 = vmul.f32 0.0078125, %v653_v35 }
 0x1c6   : > { %v659_v37 = vadd.f32 1e-12, %v657_v36  ;;  %v2504_v36 = vld [vmem:[#allocation8 + $0xc0] sm:$0xff]  }
 0x1c7   : > { %v656_v38 = vpop.xlane.xlu1 %655 }
 0x1c8   : > { %2557 = vrsqrt.f32 %v659_v37  ;;  %v658_v39 = vmul.f32 0.0078125, %v656_v38 }
 0x1ca   : > { %v660_v40 = vadd.f32 1e-12, %v658_v39  ;;  %v2506_v39 = vld [vmem:[#allocation8 + $0xc8] sm:$0xff]  }
 0x1cb   : > { %v859_v30 = vpop.permute.xlu1 %858 }
 0x1cc   : > { %2559 = vrsqrt.f32 %v660_v40 }
 0x1d2   : > { %v2558_v41 = vpop.eup %2557 }
 0x1d3   : > { %v663_v42 = vmul.f32 %v2558_v41, %v648_v13 }
 0x1d5   : > { %v672_v46 = vmul.f32 %v2021_v43, %v663_v42  ;;  %v2508_v42 = vld [vmem:[#allocation8 + $0xd0] sm:$0xff]  }
 0x1d6   : > { %v2560_v44 = vpop.eup %2559 }
 0x1d7   : > { %v664_v45 = vmul.f32 %v2560_v44, %v3082_v12  ;;  %v681_v49 = vadd.f32 %v2022_v47, %v672_v46 }
 0x1d9   : > { %v673_v48 = vmul.f32 %v2021_v43, %v664_v45  ;;  %v2509_v45 = vld [vmem:[#allocation8 + $0x80] sm:$0xff]  }
 0x1db   : > { %v682_v50 = vadd.f32 %v2022_v47, %v673_v48  ;;  %v2510_v47 = vld [vmem:[#allocation8 + $0xd8] sm:$0xff]   ;;  %v2511_v48 = vld [vmem:[#allocation8 + $0x88] sm:$0xff]  }
 0x1dd   : > { %v683_v51 = vpack.c.bf16 %v682_v50, %v681_v49  ;;  %v2512_v49 = vld [vmem:[#allocation8 + $0xe0] sm:$0xff]  }
 0x1df   : > { %825 = vmatmul.mubr.bf16.vlgmr.msra.gmra.mrb[0].mxu0 %v683_v51  ;;  %v2513_v51 = vld [vmem:[#allocation8 + $0x90] sm:$0xff]  }
 0x1e0   : > { %2218 = vmatpush3.bf16.msra.mxu0 %v2487_v52  ;;  %2233 = vmatprep.mubr.msk.bf16.mxu0 %vm2773_vm4, %v2772_v53 }
 0x1e1   : > { %2219 = vmatprep.subr.bf16.mxu0 %v2772_v53 }
 0x1e4   : > { %2220 = vmatpush3.bf16.msra.mxu0 %v2488_v54  ;;  %v2514_v54 = vld [vmem:[#allocation8 + $0xe8] sm:$0xff]  }
 0x1e5   : > { %2221 = vmatprep.subr.bf16.mxu0 %v2772_v53 }
 0x1e8   : > { %2222 = vmatpush3.bf16.msra.mxu0 %v2489_v55 }
 0x1e9   : > { %2223 = vmatprep.subr.bf16.mxu0 %v2772_v53 }
 0x1ec   : > { %2224 = vmatpush3.bf16.msra.mxu0 %v2491_v57  ;;  %v2516_v57 = vld [vmem:[#allocation8 + $0xf0] sm:$0xff]  }
 0x1ed   : > { %2225 = vmatprep.subr.bf16.mxu0 %v2772_v53 }
 0x1f0   : > { %2226 = vmatpush3.bf16.msra.mxu0 %v2493_v59 }
 0x1f1   : > { %2227 = vmatprep.subr.bf16.mxu0 %v2772_v53 }
 0x1f4   : > { %2228 = vmatpush3.bf16.msra.mxu0 %v2495_v61  ;;  %v2518_v61 = vld [vmem:[#allocation8 + $0xf8] sm:$0xff]  }
 0x1f5   : > { %2229 = vmatprep.subr.bf16.mxu0 %v2772_v53 }
 0x1f8   : > { %2230 = vmatpush3.bf16.msra.mxu0 %v2497_v63 }
 0x1f9   : > { %2231 = vmatprep.subr.bf16.mxu0 %v2772_v53 }
 0x1fc   : > { %2232 = vmatpush3.bf16.msra.mxu0 %v2499_v1  ;;  %v2520_v1 = vld [vmem:[#allocation8 + $0x140] sm:$0xff]  }
 0x1fd   : > { %2257 = vmatprep.subr.bf16.mxu0 %v2772_v53 }
 0x2b2   : > { %v826_v10 = vpop.f32.mrb[0].mxu0 }
 0x2b3   : > { %v827_v11 = vadd.f32 %v826_v10, %v705_v9  ;;  %v828_v12 = vpop.f32.mrb[1].mxu0  ;;  %v2526_v10 = vld [vmem:[#allocation8 + $0x158] sm:$0xff]  }
 0x2b4   : > { %v830_v13 = vpop.f32.mrb[2].mxu0  ;;  %v829_v24 = vadd.f32 %v828_v12, %v709_v23  ;;  %v2528_v12 = vld [vmem:[#allocation8 + $0x160] sm:$0xff]  }
 0x2b5   : > { %v2039_v14 = vmul.f32 -1.442695, %v827_v11  ;;  %v831_v15 = vadd.f32 %v830_v13, %v705_v9  ;;  %v832_v16 = vpop.f32.mrb[3].mxu0  ;;  %v2527_v11 = vld [vmem:[#allocation8 + $0x108] sm:$0xff]   ;;  %v2529_v13 = vld [vmem:[#allocation8 + $0x110] sm:$0xff]  }
 0x2b6   : > { %v833_v27 = vadd.f32 %v832_v16, %v709_v23  ;;  %v2534_v23 = vld [vmem:[#allocation8 + $0x178] sm:$0xff]  }
 0x2b7   : > { %2561 = vpow2.f32 %v2039_v14  ;;  %v2040_v17 = vmul.f32 -1.442695, %v831_v15  ;;  %v2530_v15 = vld [vmem:[#allocation8 + $0x168] sm:$0xff]  }
 0x2b9   : > { %2563 = vpow2.f32 %v2040_v17 }
 0x2c1   : > { %v2562_v18 = vpop.eup %2561 }
 0x2c2   : > { %v841_v19 = vadd.f32 1.0, %v2562_v18  ;;  %v2531_v18 = vld [vmem:[#allocation8 + $0x118] sm:$0xff]  }
 0x2c3   : > { %v2564_v20 = vpop.eup %2563 }
 0x2c4   : > { %2565 = vrcp.f32 %v841_v19  ;;  %v842_v21 = vadd.f32 1.0, %v2564_v20  ;;  %v2532_v19 = vld [vmem:[#allocation8 + $0x170] sm:$0xff]  }
 0x2c6   : > { %2567 = vrcp.f32 %v842_v21 }
 0x2ce   : > { %v2566_v25 = vpop.eup %2565 }
 0x2cf   : > { %v847_v28 = vmul.f32 %v2566_v25, %v829_v24 }
 0x2d0   : > { %v2568_v29 = vpop.eup %2567 }
 0x2d1   : > { %v861_v31 = vmul.f32 %v854_v26, %v847_v28  ;;  %v848_v32 = vmul.f32 %v2568_v29, %v833_v27  ;;  %v2535_v26 = vld [vmem:[#allocation8 + $0x128] sm:$0xff]   ;;  %v2537_v28 = vld [vmem:[#allocation8 + $0x130] sm:$0xff]   ;;  %v2538_v29 = vld [vmem:[#allocation8 + $0x138] sm:$0xff]  }
 0x2d3   : > { %v2123_v33 = vpack.c.bf16 %v861_v31, %v861_v31  ;;  %v862_v34 = vmul.f32 %v859_v30, %v848_v32  ;;  %v2540_v31 = vld [vmem:[#allocation8 + $0x180] sm:$0xff]  }
 0x2d5   : > { %871 = vst [vmem:[#allocation4] sm:$0xf] %v2123_v33  ;;  %v2124_v35 = vpack.c.bf16 %v862_v34, %v862_v34  ;;  %v2541_v33 = vld [vmem:[#allocation8 + $0x188] sm:$0xff]   ;;  %v2542_v34 = vld [vmem:[#allocation8 + $0x190] sm:$0xff]  }
 0x2d7   : > { %872 = vst [vmem:[#allocation4 + $0x4] sm:$0x7] %v2124_v35  ;;  %v2543_v35 = vld [vmem:[#allocation8 + $0x198] sm:$0xff]  }
 0x2dc   : > { %v873_v37 = vld [vmem:[#allocation4] sm:$0xf] }
 0x2dd   : > { %2234 = vmatmul.mubr.bf16.vlgmr.msra.gmra.mrb[4].mxu0 %v873_v37  ;;  %v1097_v52 = vld [vmem:[#allocation4] sm:$0xe] }
 0x2de   : > { %v3166_v38 = vld [vmem:[#allocation4 + $0x4] sm:$0x1]  ;;  %2258 = vmatpush3.bf16.msra.mxu0 %v2504_v36  ;;  %2273 = vmatprep.mubr.msk.bf16.mxu0 %vm2773_vm4, %v2772_v53  ;;  %v1328_v16 = vld [vmem:[#allocation4] sm:$0xc]  ;;  %v2544_v36 = vld [vmem:[#allocation8 + $0x1a0] sm:$0xff]  }
 0x2df   : > { %v2043_v40 = vcombine.low %v873_v37, %v3166_v38  ;;  %2259 = vmatprep.subr.bf16.mxu0 %v2772_v53  ;;  %v3178_v50 = vld [vmem:[#allocation4 + $0x4] sm:$0x3]  ;;  %v2060_v6 = vcombine.low %v1097_v52, %v3166_v38  ;;  %v2546_v38 = vld [vmem:[#allocation8 + $0x1b0] sm:$0xff]  }
 0x2e0   : > { %v2069_v55 = vcombine.low %v1097_v52, %v3178_v50  ;;  %v3202_v14 = vld [vmem:[#allocation4 + $0x4] sm:$0x7]  ;;  %v2078_v30 = vcombine.low %v1328_v16, %v3178_v50 }
 0x2e1   : > { %v916_v41 = vshll.u32 %v2043_v40, 16  ;;  %v914_v43 = vshrl.u32 %v2043_v40, 16  ;;  %v1118_v9 = vrot.slane %v2060_v6, 1  ;;  %v2087_v17 = vcombine.low %v1328_v16, %v3202_v14  ;;  %v2545_v37 = vld [vmem:[#allocation8 + $0x1a8] sm:$0xff]  }
 0x2e2   : > { %2260 = vmatpush3.bf16.msra.mxu0 %v2506_v39  ;;  %v1231_v58 = vshrl.u32 %v2069_v55, 16  ;;  %v1234_v59 = vshll.u32 %v2069_v55, 16  ;;  %v1349_v32 = vrot.slane %v2078_v30, 2  ;;  %v2547_v39 = vld [vmem:[#allocation8 + $0x1b8] sm:$0xff]   ;;  %v1559_v40 = vld [vmem:[#allocation4] sm:$0x8] }
 0x2e3   : > { %2261 = vmatprep.subr.bf16.mxu0 %v2772_v53  ;;  %v918_v44 = vrot.slane %v916_v41, 1  ;;  %v1462_v20 = vshrl.u32 %v2087_v17, 16  ;;  %v1465_v21 = vshll.u32 %v2087_v17, 16  ;;  %v2096_v41 = vcombine.low %v1559_v40, %v3202_v14 }
 0x2e4   : > { %v1233_v62 = vrot.slane %v1231_v58, 1  ;;  %v1236_v63 = vrot.slane %v1234_v59, 2 }
 0x2e5   : > { %v919_v46 = vor.u32 %v918_v44, %v914_v43  ;;  %v1464_v24 = vrot.slane %v1462_v20, 2  ;;  %v1467_v25 = vrot.slane %v1465_v21, 3  ;;  %v2549_v20 = vld [vmem:[#allocation10] sm:$0xff]   ;;  %v2550_v21 = vld [vmem:[#allocation10 + $0x8] sm:$0xff]  }
 0x2e6   : > { %2262 = vmatpush3.bf16.msra.mxu0 %v2508_v42  ;;  %v1237_v2 = vor.u32 %v1236_v63, %v1233_v62  ;;  %v1580_v42 = vrot.slane %v2096_v41, 3 }
 0x2e7   : > { %2214 = vmatmul.mubr.bf16.vlgmr.msra.gmra.mrb[0].mxu1 %v919_v46  ;;  %2263 = vmatprep.subr.bf16.mxu0 %v2772_v53  ;;  %v1468_v27 = vor.u32 %v1467_v25, %v1464_v24  ;;  %v2553_v24 = vld [vmem:[#allocation10 + $0x20] sm:$0xff]   ;;  %v2554_v25 = vld [vmem:[#allocation10 + $0x28] sm:$0xff]  }
 0x2e8   : > { %2238 = vmatpush3.bf16.msra.mxu1 %v2509_v45  ;;  %2253 = vmatprep.mubr.msk.bf16.mxu1 %vm2773_vm4, %v2772_v53 }
 0x2e9   : > { %2239 = vmatprep.subr.bf16.mxu1 %v2772_v53 }
 0x2ea   : > { %2264 = vmatpush3.bf16.msra.mxu0 %v2510_v47 }
 0x2eb   : > { %2265 = vmatprep.subr.bf16.mxu0 %v2772_v53 }
 0x2ec   : > { %2240 = vmatpush3.bf16.msra.mxu1 %v2511_v48 }
 0x2ed   : > { %2241 = vmatprep.subr.bf16.mxu1 %v2772_v53 }
 0x2ee   : > { %2266 = vmatpush3.bf16.msra.mxu0 %v2512_v49 }
 0x2ef   : > { %2267 = vmatprep.subr.bf16.mxu0 %v2772_v53 }
 0x2f0   : > { %2242 = vmatpush3.bf16.msra.mxu1 %v2513_v51 }
 0x2f1   : > { %2243 = vmatprep.subr.bf16.mxu1 %v2772_v53 }
 0x2f2   : > { %2268 = vmatpush3.bf16.msra.mxu0 %v2514_v54 }
 0x2f3   : > { %2269 = vmatprep.subr.bf16.mxu0 %v2772_v53 }
 0x2f4   : > { %2244 = vmatpush3.bf16.msra.mxu1 %v2515_v56 }
 0x2f5   : > { %2245 = vmatprep.subr.bf16.mxu1 %v2772_v53 }
 0x2f6   : > { %2270 = vmatpush3.bf16.msra.mxu0 %v2516_v57 }
 0x2f7   : > { %2271 = vmatprep.subr.bf16.mxu0 %v2772_v53 }
 0x2f8   : > { %2246 = vmatpush3.bf16.msra.mxu1 %v2517_v60 }
 0x2f9   : > { %2247 = vmatprep.subr.bf16.mxu1 %v2772_v53 }
 0x2fa   : > { %2272 = vmatpush3.bf16.msra.mxu0 %v2518_v61 }
 0x2fb   : > { %2297 = vmatprep.subr.bf16.mxu0 %v2772_v53 }
 0x2fc   : > { %2248 = vmatpush3.bf16.msra.mxu1 %v2519_v0 }
 0x2fd   : > { %2274 = vmatmul.mubr.bf16.vlgmr.msra.gmra.mrb[8].mxu0 %v1237_v2  ;;  %2249 = vmatprep.subr.bf16.mxu1 %v2772_v53 }
 0x2fe   : > { %2298 = vmatpush3.bf16.msra.mxu0 %v2520_v1  ;;  %2313 = vmatprep.mubr.msk.bf16.mxu0 %vm2773_vm4, %v2772_v53 }
 0x2ff   : > { %2299 = vmatprep.subr.bf16.mxu0 %v2772_v53 }
 0x300   : > { %2250 = vmatpush3.bf16.msra.mxu1 %v2521_v3 }
 0x301   : > { %2251 = vmatprep.subr.bf16.mxu1 %v2772_v53 }
 0x302   : > { %2300 = vmatpush3.bf16.msra.mxu0 %v2522_v4 }
 0x303   : > { %2301 = vmatprep.subr.bf16.mxu0 %v2772_v53 }
 0x304   : > { %2252 = vmatpush3.bf16.msra.mxu1 %v2523_v5 }
 0x305   : > { %2277 = vmatprep.subr.bf16.mxu1 %v2772_v53 }
 0x306   : > { %2302 = vmatpush3.bf16.msra.mxu0 %v2524_v7 }
 0x307   : > { %2254 = vmatmul.mubr.bf16.vlgmr.msra.gmra.mrb[4].mxu1 %v1118_v9  ;;  %2303 = vmatprep.subr.bf16.mxu0 %v2772_v53 }
 0x308   : > { %2278 = vmatpush3.bf16.msra.mxu1 %v2525_v8  ;;  %2293 = vmatprep.mubr.msk.bf16.mxu1 %vm2773_vm4, %v2772_v53 }
 0x309   : > { %2279 = vmatprep.subr.bf16.mxu1 %v2772_v53 }
 0x30a   : > { %2304 = vmatpush3.bf16.msra.mxu0 %v2526_v10  ;;  %v2105_v10 = vld [vmem:[%s3368_s4] ss:$0 sm:$0xff] }
 0x30b   : > { %2305 = vmatprep.subr.bf16.mxu0 %v2772_v53 }
 0x30c   : > { %2280 = vmatpush3.bf16.msra.mxu1 %v2527_v11 }
 0x30d   : > { %2281 = vmatprep.subr.bf16.mxu1 %v2772_v53 }
 0x30e   : > { %2306 = vmatpush3.bf16.msra.mxu0 %v2528_v12 }
 0x30f   : > { %2307 = vmatprep.subr.bf16.mxu0 %v2772_v53 }
 0x310   : > { %2282 = vmatpush3.bf16.msra.mxu1 %v2529_v13 }
 0x311   : > { %2283 = vmatprep.subr.bf16.mxu1 %v2772_v53 }
 0x312   : > { %2308 = vmatpush3.bf16.msra.mxu0 %v2530_v15 }
 0x313   : > { %2309 = vmatprep.subr.bf16.mxu0 %v2772_v53 }
 0x314   : > { %2284 = vmatpush3.bf16.msra.mxu1 %v2531_v18 }
 0x315   : > { %2285 = vmatprep.subr.bf16.mxu1 %v2772_v53 }
 0x316   : > { %2310 = vmatpush3.bf16.msra.mxu0 %v2532_v19 }
 0x317   : > { %2311 = vmatprep.subr.bf16.mxu0 %v2772_v53 }
 0x318   : > { %2286 = vmatpush3.bf16.msra.mxu1 %v2533_v22  ;;  %v2551_v22 = vld [vmem:[#allocation10 + $0x10] sm:$0xff]  }
 0x319   : > { %2287 = vmatprep.subr.bf16.mxu1 %v2772_v53 }
 0x31a   : > { %2312 = vmatpush3.bf16.msra.mxu0 %v2534_v23  ;;  %v2552_v23 = vld [vmem:[#allocation10 + $0x18] sm:$0xff]  }
 0x31b   : > { %2337 = vmatprep.subr.bf16.mxu0 %v2772_v53 }
 0x31c   : > { %2288 = vmatpush3.bf16.msra.mxu1 %v2535_v26  ;;  %v2555_v26 = vld [vmem:[#allocation10 + $0x30] sm:$0xff]  }
 0x31d   : > { %2314 = vmatmul.mubr.bf16.vlgmr.msra.gmra.mrb[12].mxu0 %v1468_v27  ;;  %2289 = vmatprep.subr.bf16.mxu1 %v2772_v53  ;;  %v2556_v27 = vld [vmem:[#allocation10 + $0x38] sm:$0xff]  }
 0x31e   : > { %2353 = vmatprep.mubr.msk.bf16.mxu0 %vm2773_vm4, %v2772_v53  ;;  %2338 = vmatpush3.bf16.msra.mxu0 %v2549_v20 }
 0x31f   : > { %2339 = vmatprep.subr.bf16.mxu0 %v2772_v53 }
 0x320   : > { %2290 = vmatpush3.bf16.msra.mxu1 %v2537_v28 }
 0x321   : > { %2291 = vmatprep.subr.bf16.mxu1 %v2772_v53 }
 0x322   : > { %2340 = vmatpush3.bf16.msra.mxu0 %v2550_v21 }
 0x323   : > { %2341 = vmatprep.subr.bf16.mxu0 %v2772_v53 }
 0x324   : > { %2292 = vmatpush3.bf16.msra.mxu1 %v2538_v29 }
 0x325   : > { %2317 = vmatprep.subr.bf16.mxu1 %v2772_v53 }
 0x326   : > { %2342 = vmatpush3.bf16.msra.mxu0 %v2551_v22 }
 0x327   : > { %2294 = vmatmul.mubr.bf16.vlgmr.msra.gmra.mrb[8].mxu1 %v1349_v32  ;;  %2343 = vmatprep.subr.bf16.mxu0 %v2772_v53  ;;  %v2106_v32 = vld [vmem:[%s3369_s25] ss:$0 sm:$0xff]  ;;  %s2774_s25 = smov [#allocation11]  }
 0x328   : > { %2318 = vmatpush3.bf16.msra.mxu1 %v2540_v31  ;;  %2333 = vmatprep.mubr.msk.bf16.mxu1 %vm2773_vm4, %v2772_v53  ;;  %s2666_s3 = sshll.u32 %s2774_s25, 4  ;;  %s2667_s3 = int_to_ptr.vmem [resolvable:$false] %s2666_s3 }
 0x329   : > { %2319 = vmatprep.subr.bf16.mxu1 %v2772_v53  ;;  %s2668_s13 = scalar_lea.vmem %s2667_s3, 256  ;;  %p2669_p2 = scmp.lt.s32.totalorder %s3257_s28, %s2667_s3 }
 0x32a   : > { %2344 = vmatpush3.bf16.msra.mxu0 %v2552_v23  ;;  %p2670_p6 = scmp.lt.s32.totalorder %s2668_s13, %s2662_s29 }
 0x32b   : > { %2345 = vmatprep.subr.bf16.mxu0 %v2772_v53 }
 0x32c   : > { %2320 = vmatpush3.bf16.msra.mxu1 %v2541_v33  ;;  %p2671_p11 = por %p2670_p6, %p2669_p2 }
 0x32d   : > { %2321 = vmatprep.subr.bf16.mxu1 %v2772_v53 }
 0x32e   : > { %2346 = vmatpush3.bf16.msra.mxu0 %v2553_v24  ;;  %p2672_p10 = pnand %p2671_p11, %p2665_p13 }
 0x32f   : > { %2347 = vmatprep.subr.bf16.mxu0 %v2772_v53 }
 0x330   : > { %2322 = vmatpush3.bf16.msra.mxu1 %v2542_v34  ;;  %v2107_v34 = vld [vmem:[%s3370_s8] ss:$0 sm:$0xff] }
 0x331   : > { %2323 = vmatprep.subr.bf16.mxu1 %v2772_v53 }
 0x332   : > { %2348 = vmatpush3.bf16.msra.mxu0 %v2554_v25 }
 0x333   : > { %2349 = vmatprep.subr.bf16.mxu0 %v2772_v53 }
 0x334   : > { %2324 = vmatpush3.bf16.msra.mxu1 %v2543_v35 }
 0x335   : > { %2325 = vmatprep.subr.bf16.mxu1 %v2772_v53 }
 0x336   : > { %2350 = vmatpush3.bf16.msra.mxu0 %v2555_v26 }
 0x337   : > { %2351 = vmatprep.subr.bf16.mxu0 %v2772_v53 }
 0x338   : > { %2326 = vmatpush3.bf16.msra.mxu1 %v2544_v36 }
 0x339   : > { %2327 = vmatprep.subr.bf16.mxu1 %v2772_v53 }
 0x33a   : > { %2352 = vmatpush3.bf16.msra.mxu0 %v2556_v27 }
 0x33c   : > { %2328 = vmatpush3.bf16.msra.mxu1 %v2545_v37 }
 0x33d   : > { %2329 = vmatprep.subr.bf16.mxu1 %v2772_v53 }
 0x340   : > { %2330 = vmatpush3.bf16.msra.mxu1 %v2546_v38 }
 0x341   : > { %2331 = vmatprep.subr.bf16.mxu1 %v2772_v53 }
 0x344   : > { %2332 = vmatpush3.bf16.msra.mxu1 %v2547_v39 }
 0x347   : > { %2334 = vmatmul.mubr.bf16.vlgmr.msra.gmra.mrb[12].mxu1 %v1580_v42  ;;  %v2109_v42 = vld [vmem:[%s3371_s27] ss:$0 sm:$0xff] }
 0x3b0   : > { %v1091_v43 = vpop.f32.mrb[4].mxu0 }
 0x3b1   : > { %v2235_v44 = vpop.f32.mrb[5].mxu0 }
 0x3b2   : > { %v1094_v45 = vpop.f32.mrb[6].mxu0 }
 0x3b3   : > { %v2236_v46 = vpop.f32.mrb[7].mxu0 }
 0x3ba   : > { %v1003_v47 = vpop.f32.mrb[0].mxu1 }
 0x3bb   : > { %v1092_v48 = vadd.f32 %v1091_v43, %v1003_v47  ;;  %v2215_v49 = vpop.f32.mrb[1].mxu1  ;;  %v2575_v47 = vld [vmem:[#allocation2 + $0x3] sm:$0xff] }
 0x3bc   : > { %v1006_v50 = vpop.f32.mrb[2].mxu1 }
 0x3bd   : > { %v2216_v51 = vpop.f32.mrb[3].mxu1 }
 0x3d0   : > { %v1321_v52 = vpop.f32.mrb[8].mxu0 }
 0x3d1   : > { %v2275_v54 = vpop.f32.mrb[9].mxu0 }
 0x3d2   : > { %v1324_v55 = vpop.f32.mrb[10].mxu0 }
 0x3d3   : > { %v2276_v56 = vpop.f32.mrb[11].mxu0 }
 0x3da   : > { %v1202_v57 = vpop.f32.mrb[4].mxu1 }
 0x3db   : > { %v1208_v58 = vadd.f32 %v1202_v57, %v1092_v48  ;;  %v2255_v59 = vpop.f32.mrb[5].mxu1 }
 0x3dc   : > { %v1205_v60 = vpop.f32.mrb[6].mxu1 }
 0x3dd   : > { %v2256_v61 = vpop.f32.mrb[7].mxu1  ;;  %v1327_v62 = vadd.f32 %v1321_v52, %v1208_v58 }
 0x3f0   : > { %v1552_v63 = vpop.f32.mrb[12].mxu0 }
 0x3f1   : > { %v2315_v0 = vpop.f32.mrb[13].mxu0 }
 0x3f2   : > { %v1555_v1 = vpop.f32.mrb[14].mxu0 }
 0x3f3   : > { %v2316_v2 = vpop.f32.mrb[15].mxu0 }
 0x3fa   : > { %v1433_v3 = vpop.f32.mrb[8].mxu1 }
 0x3fb   : > { %v1439_v4 = vadd.f32 %v1433_v3, %v1327_v62  ;;  %v2295_v5 = vpop.f32.mrb[9].mxu1 }
 0x3fc   : > { %v1436_v6 = vpop.f32.mrb[10].mxu1 }
 0x3fd   : > { %v2296_v7 = vpop.f32.mrb[11].mxu1  ;;  %v1558_v8 = vadd.f32 %v1552_v63, %v1439_v4 }
 0x41a   : > { %v1664_v9 = vpop.f32.mrb[12].mxu1 }
 0x41b   : > { %v1670_v11 = vadd.f32 %v1664_v9, %v1558_v8  ;;  %v2335_v12 = vpop.f32.mrb[13].mxu1 }
 0x41c   : > { %v1667_v13 = vpop.f32.mrb[14].mxu1 }
 0x41d   : > { %v2336_v14 = vpop.f32.mrb[15].mxu1  ;;  %v1678_v15 = vadd.f32 %v2105_v10, %v1670_v11 }
 0x41f   : > { %1679 = vadd.xlane.f32.xlu1 %v1678_v15 }
 0x4ac   : > { %v1680_v16 = vpop.xlane.xlu1 %1679 }
 0x4ad   : > { %v1681_v17 = vmul.f32 0.0078125, %v1680_v16 }
 0x4af   : > { %v1682_v18 = vsub.f32 %v1678_v15, %v1681_v17 }
 0x4b1   : > { %v1683_v19 = vmul.f32 %v1682_v18, %v1682_v18 }
 0x4b3   : > { %1684 = vadd.xlane.f32.xlu0 %v1683_v19 }
 0x540   : > { %v1685_v28 = vpop.xlane.xlu0 %1684 }
 0x541   : > { %v1686_v29 = vmul.f32 0.0078125, %v1685_v28 }
 0x543   : > { %v1687_v30 = vadd.f32 1e-12, %v1686_v29 }
 0x545   : > { %2569 = vrsqrt.f32 %v1687_v30 }
 0x54f   : > { %v2570_v31 = vpop.eup %2569 }
 0x550   : > { %v1689_v33 = vmul.f32 %v2570_v31, %v1682_v18 }
 0x552   : > { %v1697_v35 = vmul.f32 %v2106_v32, %v1689_v33 }
 0x554   : > { %v1705_v53 = vadd.f32 %v2107_v34, %v1697_v35 }
 0x556   : > { %v2108_v36 = vmul.f32 -1.442695, %v1705_v53 }
 0x558   : > { %2571 = vpow2.f32 %v2108_v36 }
 0x562   : > { %v2572_v37 = vpop.eup %2571 }
 0x563   : > { %v1709_v38 = vadd.f32 1.0, %v2572_v37 }
 0x565   : > { %2573 = vrcp.f32 %v1709_v38 }
 0x56f   : > { %v2574_v39 = vpop.eup %2573 }
 0x570   : > { %v1712_v40 = vmul.f32 %v2574_v39, %v1705_v53 }
 0x572   : > { %v1713_v41 = vpack.c.bf16 %v1712_v40, %v1712_v40 }
 0x574   : > { %2354 = vmatmul.mubr.bf16.vlgmr.msra.gmra.mrb[16].mxu0 %v1713_v41 }
 0x647   : > { %v1819_v43 = vpop.f32.mrb[16].mxu0 }
 0x648   : > { %v1820_v44 = vadd.f32 %v2109_v42, %v1819_v43  ;;  %v2355_v45 = vpop.f32.mrb[17].mxu0 }
 0x649   : > { %v1822_v46 = vpop.f32.mrb[18].mxu0 }
 0x64a   : > { %v1825_v48 = vadd.f32 %v2575_v47, %v1820_v44  ;;  %v2356_v49 = vpop.f32.mrb[19].mxu0 }
 0x64c   : > { %1826 = vst [vmem:[%s598_s14] sm:$0xff] %v1825_v48 }
 0x64d   : > { %2675 = shalt.err (!%p2672_p10)
}
 0x64e   : > { %s2676_s7 = scalar_lea.hbm %s3255_s16, 128  ;;  %s2680_s10 = scalar_lea.hbm %s3373_s5, 512 }
 0x64f   : > { %p2677_p1 = scmp.ne.s32.totalorder %s3255_s16, %s2676_s7  ;;  %p2681_p0 = scmp.lt.u32.totalorder %s3255_s16, %s3373_s5 }
 0x650   : > { %p2682_p3 = scmp.lt.u32.totalorder %s2680_s10, %s2676_s7  ;;  %p2684_p7 = scmp.lt.u32.totalorder %s2676_s7, %s3255_s16 }
 0x651   : > { %p2678_p8 = pnand %p2677_p1, %p2986_p9 }
 0x652   : > { %p2683_p5 = por %p2682_p3, %p2681_p0 }
 0x653   : > { %p2679_p4 = pneg %p2678_p8 }
 0x654   : > { %p2685_p12 = por %p2684_p7, %p2683_p5 }
 0x656   : > { %p2686_p13 = pnand %p2685_p12, %p2679_p4 }
 0x658   : > { %2689 = shalt.err (!%p2686_p13)
}
 0x659   : > { %2367 = dma.vmem_to_hbm [thread:$0]  (%p2986_p9), %s3257_s28, 128, %s3255_s16, %s1828_s9  }
 0x65a PF: > { %s3374_s27 = sld [smem:[#allocation15_spill]]  ;;  %s3375_s21 = sld [smem:[#allocation16_spill]] }
 0x65b   : > { %p2389_p2 = scmp.ge.s32.totalorder %s2764_s20, 2 }
 0x660   : > { %s1855_s14 = sand.u32 1, %s3374_s27   ;;  %p3376_p6 = scmp.ne.s32.totalorder %s3375_s21, 0 }
 0x661   : > { %s1856_s4 = scalar_lea.sflag [#allocation7], %s1855_s14 }
 0x662   : > { %p2381_p11 = pnand %p2389_p2, %p3376_p6 }
 0x664   : > { %2731 = dma.done.wait (!%p2381_p11), %s1856_s4, 128  }
 0x665   : > { %2733 = vsyncadd (!%p2381_p11), %s1856_s4, 4294967168  ;;  %s31_s20 = sadd.s32 1, %s2764_s20   ;;  %s3377_s23 = sld [smem:[#allocation17_spill]] }
 0x666   : > { %p28_p10 = scmp.ge.s32.totalorder %s31_s20, 6   ;;  %s3378_s29 = smov %s2740_s30 }
 0x667   : > { %s3379_s30 = smov %s2744_s15  ;;  %s3380_s15 = smov %s3003_s12 }
 0x668   : > { %s3381_s16 = smov %s2756_s18  ;;  %s3382_s17 = smov %s2760_s19 }
 0x669   : > { %s3384_s19 = smov %s3390_s22  ;;  %30 = sbr.rel (!%p28_p10) target bundleno = 20 (0x14), region = 144 }
 0x66b   : > { %s3383_s18 = smov %s3377_s23 }
 0x670   :  { %1861 = vsyncpa [#allocation6], 1 }
 0x671   :  { %1863 = vsyncpa [#allocation6 + $0x1], 1 }
 0x672   :  { %1864 = vsyncpa [#allocation9], 1 }
 0x673   :  { %1865 = vsyncpa [#allocation7], 1 }
 0x674   :  { %1867 = vsyncpa [#allocation7 + $0x1], 1 }

</bundles_post_ra>
